<compile_context>
chip_gen: v6e
topology: v6e:2x2x1
jax: 0.10.0
libtpu: 0.0.40
codegen_flags: <defaults>
</compile_context>

<pallas_src>
import functools

import jax
import jax.numpy as jnp
from jax import lax
from jax.experimental import pallas as pl
from jax.experimental.pallas import tpu as pltpu


# 3x3 taps in (dy, dx) order; tap index t = (dy+1)*3 + (dx+1) matches the
# (kH, kW)-major flattening of the PyTorch OIHW conv weight.
_TAPS = tuple((dy, dx) for dy in (-1, 0, 1) for dx in (-1, 0, 1))


def _make_conv_sim_kernel(W, N, E, E2):
    """Fused conv3x3+BN+ReLU -> conv3x3+BN+ReLU -> conv1x1 -> sigmoid."""

    def kernel(xl_ref, xf_ref, m1_ref, m2_ref,
               w1_ref, b1_ref, w2_ref, b2_ref, w3_ref, b3_ref,
               o_ref, slab1_ref, slab2_ref):
        # Shapes (single grid step, batch folded into lanes, N = B*H*W):
        #   xl_ref, xf_ref : (E, N)     f32  channels on sublanes, pixels on lanes
        #   m1_ref         : (9*2E, N)  f32  0/1 zero-pad mask, slab-row layout
        #   m2_ref         : (9*E, N)   f32
        #   w1_ref         : (E, 9*2E)  bf16 conv1 weights, taps stacked on K
        #   w2_ref         : (E2, 9*E)  bf16
        #   b1_ref (E,1) / b2_ref (E2,1) / w3_ref (E2,1)  f32 in VMEM
        #   b3_ref         : (1, 1)     f32 scalar in SMEM
        #   o_ref          : (1, N)     f32
        #   slab1_ref/slab2_ref : VMEM scratch slabs (K-stacked conv inputs)
        xl = xl_ref[...]
        xf = xf_ref[...]

        def stack_taps(slab_ref, xs, cin):
            # Write roll(x, tap offset) for every tap / input half into the
            # K-stacked slab.  pltpu.roll is an XLU lane rotation (free-ish,
            # own VLIW slot).  Wraparound pixels (image or batch boundary) are
            # zeroed by the slab mask afterwards, so correctness holds.
            for t, (dy, dx) in enumerate(_TAPS):
                d = dy * W + dx
                shift = (-d) % N          # non-negative, same as roll by -d
                for j, x in enumerate(xs):
                    r = x if d == 0 else pltpu.roll(x, shift, axis=1)
                    slab_ref[pl.ds((t * len(xs) + j) * cin, cin), :] = r

        # conv1: 3x3, 2E -> E (BN folded) + ReLU.  One K = 9*2E contraction.
        stack_taps(slab1_ref, (xl, xf), E)
        a1 = (slab1_ref[...] * m1_ref[...]).astype(jnp.bfloat16)
        h1 = jnp.dot(w1_ref[...], a1, preferred_element_type=jnp.float32)
        h1 = jnp.maximum(h1 + b1_ref[...], 0.0)                 # (E, N) f32

        # conv2: 3x3, E -> E/2 (BN folded) + ReLU.  One K = 9*E contraction.
        stack_taps(slab2_ref, (h1,), E)
        a2 = (slab2_ref[...] * m2_ref[...]).astype(jnp.bfloat16)
        h2 = jnp.dot(w2_ref[...], a2, preferred_element_type=jnp.float32)
        h2 = jnp.maximum(h2 + b2_ref[...], 0.0)                 # (E2, N) f32

        # conv3: 1x1, E/2 -> 1, + sigmoid.  VPU multiply + sublane reduce
        # keeps the store lane-dense (no M=1 MXU matmul / masked 1-lane store).
        y = jnp.sum(h2 * w3_ref[...], axis=0, keepdims=True) + b3_ref[0, 0]
        o_ref[...] = jax.nn.sigmoid(y)

    return kernel


def _conv_sim_pallas(xl, xf, m1, m2, params, W):
    E, N = xl.shape
    E2 = params["b2"].shape[0]
    K1, K2 = 9 * 2 * E, 9 * E

    flops = 2 * N * (E * K1 + E2 * K2 + E2) + N * (K1 + K2)
    bytes_accessed = (4 * (2 * E * N + (K1 + K2) * N + E + 2 * E2 + 1 + N)
                      + 2 * (E * K1 + E2 * K2))              # + output writeback

    return pl.pallas_call(
        _make_conv_sim_kernel(W, N, E, E2),
        out_shape=jax.ShapeDtypeStruct((1, N), jnp.float32),
        # Single grid step: total work is ~0.4 MFLOP at these sizes, so any
        # extra grid steps are pure per-step overhead; batch lives on lanes.
        grid=(1,),
        in_specs=[
            pl.BlockSpec((E, N), lambda i: (0, 0)),        # last_featmap
            pl.BlockSpec((E, N), lambda i: (0, 0)),        # featmap
            pl.BlockSpec((K1, N), lambda i: (0, 0)),       # conv1 slab mask
            pl.BlockSpec((K2, N), lambda i: (0, 0)),       # conv2 slab mask
            pl.BlockSpec((E, K1), lambda i: (0, 0)),       # w1 packed (bf16)
            pl.BlockSpec((E, 1), lambda i: (0, 0)),        # b1 (BN folded)
            pl.BlockSpec((E2, K2), lambda i: (0, 0)),      # w2 packed (bf16)
            pl.BlockSpec((E2, 1), lambda i: (0, 0)),       # b2 (BN folded)
            pl.BlockSpec((E2, 1), lambda i: (0, 0)),       # w3 (1x1)
            pl.BlockSpec(memory_space=pltpu.MemorySpace.SMEM),  # b3 scalar
        ],
        out_specs=pl.BlockSpec((1, N), lambda i: (0, 0)),
        scratch_shapes=[pltpu.VMEM((K1, N), jnp.float32),
                        pltpu.VMEM((K2, N), jnp.float32)],
        compiler_params=pltpu.CompilerParams(
            dimension_semantics=("arbitrary",),
            vmem_limit_bytes=32 * 1024 * 1024,
        ),
        cost_estimate=pl.CostEstimate(
            flops=int(flops),
            transcendentals=int(N),
            bytes_accessed=int(bytes_accessed)),
    )(xl, xf, m1, m2, params["w1"], params["b1"], params["w2"],
      params["b2"], params["w3"], params["b3"])


def _slab_masks(B, H, W, E):
    """0/1 zero-padding masks pre-expanded to slab-row layout (row = t*Cin + c).

    Depends only on static shapes -> XLA constant-folds it inside the jit.
    """
    HW = H * W
    idx = jnp.arange(HW, dtype=jnp.int32)
    row, col = idx // W, idx % W
    taps = []
    for dy, dx in _TAPS:
        taps.append((row + dy >= 0) & (row + dy < H) &
                    (col + dx >= 0) & (col + dx < W))
    tap = jnp.stack(taps).astype(jnp.float32)      # (9, HW)
    tap = jnp.tile(tap, (1, B))                    # (9, B*HW): same mask per image
    m1 = jnp.repeat(tap, 2 * E, axis=0)            # (9*2E, B*HW)
    m2 = jnp.repeat(tap, E, axis=0)                # (9*E,  B*HW)
    return m1, m2


@functools.partial(jax.jit, static_argnames=("size", "embed_dim"))
def conv_sim_block(last_featmap, featmap, size, params, embed_dim):
    """Forward pass of ConvSimBlock.  Inputs/outputs are NCHW like PyTorch."""
    B, E, H, W = featmap.shape
    assert E == embed_dim and last_featmap.shape == featmap.shape
    HW, N = H * W, B * H * W
    # Fold batch into the lane axis: (B,E,H,W) -> (E, B*HW).  The transpose is
    # a few KB of XLA copy; everything downstream is lane-dense over B*HW.
    xl = jnp.transpose(last_featmap.reshape(B, E, HW), (1, 0, 2)).reshape(E, N)
    xf = jnp.transpose(featmap.reshape(B, E, HW), (1, 0, 2)).reshape(E, N)
    # TODO(synk): generate the masks in-kernel from broadcasted_iota if HW ever
    # grows enough for the (9*3E, N) mask residency to matter (v7x 64 MiB VMEM);
    # at these sizes a constant-folded input is simpler and ~200 KB.
    m1, m2 = _slab_masks(B, H, W, E)

    sim = _conv_sim_pallas(xl, xf, m1, m2, params, W)     # (1, B*HW)
    sim = sim.reshape(B, 1, H, W)

    if (H, W) != tuple(size):
        # Glue, not a hot path: bilinear, half-pixel centers (~align_corners=False).
        sim = jax.image.resize(sim, (B, 1, size[0], size[1]), method="bilinear")
    return sim


# ---------------------------------------------------------------------------
# Parameters (deterministic, synthetic) + pure-JAX reference.
# ---------------------------------------------------------------------------
def init_params(embed_dim, key):
    """Returns (kernel_params, ref_params) with eval-mode BN folded in."""
    E, E2 = embed_dim, embed_dim // 2
    ks = jax.random.split(key, 6)
    s = 0.1
    # PyTorch-layout (OIHW) conv weights/biases.
    w1 = jax.random.normal(ks[0], (E, 2 * E, 3, 3), jnp.float32) * s
    b1 = jax.random.normal(ks[1], (E,), jnp.float32) * s
    w2 = jax.random.normal(ks[2], (E2, E, 3, 3), jnp.float32) * s
    b2 = jax.random.normal(ks[3], (E2,), jnp.float32) * s
    w3 = jax.random.normal(ks[4], (1, E2, 1, 1), jnp.float32) * s
    b3 = jax.random.normal(ks[5], (1,), jnp.float32) * s

    # BatchNorm2d (eval mode) at deterministic init (gamma=1, beta=0,
    # running_mean=0, running_var=1), folded into the preceding conv.
    # TODO(synk): fold trained running stats here when porting real weights.
    eps = 1e-5

    def fold_bn(w, b, c):
        gamma, beta = jnp.ones((c,)), jnp.zeros((c,))
        mean, var = jnp.zeros((c,)), jnp.ones((c,))
        scale = gamma / jnp.sqrt(var + eps)
        return w * scale[:, None, None, None], (b - mean) * scale + beta

    w1_bn, b1_bn = fold_bn(w1, b1, E)
    w2_bn, b2_bn = fold_bn(w2, b2, E2)

    def to_mat(w):
        # (O, I, 3, 3) -> (O, 9*I); column = (kh*3+kw)*I + i, matching the
        # slab row layout (tap-major, then input channel).  torch.cat order
        # [last_featmap, featmap] is preserved by the input-channel index.
        O, I = w.shape[0], w.shape[1]
        return jnp.transpose(w, (0, 2, 3, 1)).reshape(O, 9 * I)

    kernel_params = dict(
        w1=to_mat(w1_bn).astype(jnp.bfloat16),   # MXU-side dtype
        b1=b1_bn.reshape(E, 1),
        w2=to_mat(w2_bn).astype(jnp.bfloat16),
        b2=b2_bn.reshape(E2, 1),
        w3=w3.reshape(E2, 1),
        b3=b3.reshape(1, 1),
    )
    ref_params = dict(w1=w1_bn, b1=b1_bn, w2=w2_bn, b2=b2_bn, w3=w3, b3=b3)
    return kernel_params, ref_params


def reference_forward(last_featmap, featmap, size, ref_params):
    """Pure-JAX f32 reference of the PyTorch module (eval-mode BN folded)."""
    x = jnp.concatenate([last_featmap, featmap], axis=1)

    def conv(x, w, b, padding):
        y = lax.conv_general_dilated(
            x, w, window_strides=(1, 1), padding=padding,
            dimension_numbers=("NCHW", "OIHW", "NCHW"),
            precision=lax.Precision.HIGHEST)
        return y + b.reshape(1, -1, 1, 1)

    y = jax.nn.relu(conv(x, ref_params["w1"], ref_params["b1"], [(1, 1), (1, 1)]))
    y = jax.nn.relu(conv(y, ref_params["w2"], ref_params["b2"], [(1, 1), (1, 1)]))
    y = conv(y, ref_params["w3"], ref_params["b3"], [(0, 0), (0, 0)])
    sim = jax.nn.sigmoid(y)
    if sim.shape[-2:] != tuple(size):
        sim = jax.image.resize(sim, sim.shape[:2] + tuple(size), method="bilinear")
    return sim


if __name__ == "__main__":
    B, E, H, W = 2, 4, 16, 16
    key = jax.random.PRNGKey(0)
    k_last, k_feat, k_params = jax.random.split(key, 3)
    last_featmap = jax.random.normal(k_last, (B, E, H, W), jnp.float32)
    featmap = jax.random.normal(k_feat, (B, E, H, W), jnp.float32)
    kernel_params, ref_params = init_params(E, k_params)

    sim = conv_sim_block(last_featmap, featmap, (H, W), kernel_params,
                         embed_dim=E)
    sim = jax.block_until_ready(sim)

    assert sim.shape == (B, 1, H, W)
    assert bool(jnp.all(jnp.isfinite(sim)))
    assert bool(jnp.all((sim >= 0.0) & (sim <= 1.0)))

    ref = reference_forward(last_featmap, featmap, (H, W), ref_params)
    err = float(jnp.max(jnp.abs(sim - ref)))
    assert err < 2e-3, f"kernel/reference mismatch: max|diff|={err}"
    print("KERNEL_OK")
</pallas_src>

<mosaic_0001>
module attributes {stable_mosaic.version = 11 : i64} {
  func.func @kernel(%arg0: i32, %arg1: memref<4x512xf32, #tpu.memory_space<vmem>>, %arg2: memref<4x512xf32, #tpu.memory_space<vmem>>, %arg3: memref<72x512xf32, #tpu.memory_space<vmem>>, %arg4: memref<36x512xf32, #tpu.memory_space<vmem>>, %arg5: memref<4x72xbf16, #tpu.memory_space<vmem>>, %arg6: memref<4x1xf32, #tpu.memory_space<vmem>>, %arg7: memref<2x36xbf16, #tpu.memory_space<vmem>>, %arg8: memref<2x1xf32, #tpu.memory_space<vmem>>, %arg9: memref<2x1xf32, #tpu.memory_space<vmem>>, %arg10: memref<1x1xf32, #tpu.memory_space<smem>>, %arg11: memref<1x512xf32, #tpu.memory_space<vmem>>, %arg12: memref<72x512xf32, #tpu.memory_space<vmem>>, %arg13: memref<36x512xf32, #tpu.memory_space<vmem>>) attributes {dimension_semantics = [#tpu.dimension_semantics<arbitrary>], iteration_bounds = array<i64: 1>, scalar_prefetch = 0 : i64, scratch_operands = 2 : i64, tpu.core_type = #tpu.core_type<tc>, window_params = [{pipeline_mode = #tpu.pipeline_mode<synchronous>, transform_indices = @transform_0, window_bounds = array<i64: 4, 512>}, {pipeline_mode = #tpu.pipeline_mode<synchronous>, transform_indices = @transform_1, window_bounds = array<i64: 4, 512>}, {pipeline_mode = #tpu.pipeline_mode<synchronous>, transform_indices = @transform_2, window_bounds = array<i64: 72, 512>}, {pipeline_mode = #tpu.pipeline_mode<synchronous>, transform_indices = @transform_3, window_bounds = array<i64: 36, 512>}, {pipeline_mode = #tpu.pipeline_mode<synchronous>, transform_indices = @transform_4, window_bounds = array<i64: 4, 72>}, {pipeline_mode = #tpu.pipeline_mode<synchronous>, transform_indices = @transform_5, window_bounds = array<i64: 4, 1>}, {pipeline_mode = #tpu.pipeline_mode<synchronous>, transform_indices = @transform_6, window_bounds = array<i64: 2, 36>}, {pipeline_mode = #tpu.pipeline_mode<synchronous>, transform_indices = @transform_7, window_bounds = array<i64: 2, 1>}, {pipeline_mode = #tpu.pipeline_mode<synchronous>, transform_indices = @transform_8, window_bounds = array<i64: 2, 1>}, {transform_indices = @transform_9, window_bounds = array<i64: 1, 1>}, {pipeline_mode = #tpu.pipeline_mode<synchronous>, transform_indices = @transform_10, window_bounds = array<i64: 1, 512>}]} {
    %c0 = arith.constant 0 : index
    %c0_0 = arith.constant 0 : index
    %0 = vector.load %arg1[%c0, %c0_0] : memref<4x512xf32, #tpu.memory_space<vmem>>, vector<4x512xf32>
    %c0_1 = arith.constant 0 : index
    %c0_2 = arith.constant 0 : index
    %1 = vector.load %arg2[%c0_1, %c0_2] : memref<4x512xf32, #tpu.memory_space<vmem>>, vector<4x512xf32>
    %c17_i32 = arith.constant 17 : i32
    %2 = tpu.dynamic_rotate %0 by %c17_i32 dim 1 : vector<4x512xf32>, i32 -> vector<4x512xf32>
    %c0_3 = arith.constant 0 : index
    %c0_4 = arith.constant 0 : index
    %3 = vector.load %arg12[%c0_3, %c0_4] : memref<72x512xf32, #tpu.memory_space<vmem>>, vector<4x512xf32>
    tpu.vector_store %arg12[%c0_3, %c0_4], %2 {strides = array<i32>} : memref<72x512xf32, #tpu.memory_space<vmem>>, vector<4x512xf32>,
    %c17_i32_5 = arith.constant 17 : i32
    %4 = tpu.dynamic_rotate %1 by %c17_i32_5 dim 1 : vector<4x512xf32>, i32 -> vector<4x512xf32>
    %c4 = arith.constant 4 : index
    %c0_6 = arith.constant 0 : index
    %5 = vector.load %arg12[%c4, %c0_6] : memref<72x512xf32, #tpu.memory_space<vmem>>, vector<4x512xf32>
    tpu.vector_store %arg12[%c4, %c0_6], %4 {strides = array<i32>} : memref<72x512xf32, #tpu.memory_space<vmem>>, vector<4x512xf32>,
    %c16_i32 = arith.constant 16 : i32
    %6 = tpu.dynamic_rotate %0 by %c16_i32 dim 1 : vector<4x512xf32>, i32 -> vector<4x512xf32>
    %c8 = arith.constant 8 : index
    %c0_7 = arith.constant 0 : index
    %7 = vector.load %arg12[%c8, %c0_7] : memref<72x512xf32, #tpu.memory_space<vmem>>, vector<4x512xf32>
    tpu.vector_store %arg12[%c8, %c0_7], %6 {strides = array<i32>} : memref<72x512xf32, #tpu.memory_space<vmem>>, vector<4x512xf32>,
    %c16_i32_8 = arith.constant 16 : i32
    %8 = tpu.dynamic_rotate %1 by %c16_i32_8 dim 1 : vector<4x512xf32>, i32 -> vector<4x512xf32>
    %c12 = arith.constant 12 : index
    %c0_9 = arith.constant 0 : index
    %9 = vector.load %arg12[%c12, %c0_9] : memref<72x512xf32, #tpu.memory_space<vmem>>, vector<4x512xf32>
    tpu.vector_store %arg12[%c12, %c0_9], %8 {strides = array<i32>} : memref<72x512xf32, #tpu.memory_space<vmem>>, vector<4x512xf32>,
    %c15_i32 = arith.constant 15 : i32
    %10 = tpu.dynamic_rotate %0 by %c15_i32 dim 1 : vector<4x512xf32>, i32 -> vector<4x512xf32>
    %c16 = arith.constant 16 : index
    %c0_10 = arith.constant 0 : index
    %11 = vector.load %arg12[%c16, %c0_10] : memref<72x512xf32, #tpu.memory_space<vmem>>, vector<4x512xf32>
    tpu.vector_store %arg12[%c16, %c0_10], %10 {strides = array<i32>} : memref<72x512xf32, #tpu.memory_space<vmem>>, vector<4x512xf32>,
    %c15_i32_11 = arith.constant 15 : i32
    %12 = tpu.dynamic_rotate %1 by %c15_i32_11 dim 1 : vector<4x512xf32>, i32 -> vector<4x512xf32>
    %c20 = arith.constant 20 : index
    %c0_12 = arith.constant 0 : index
    %13 = vector.load %arg12[%c20, %c0_12] : memref<72x512xf32, #tpu.memory_space<vmem>>, vector<4x512xf32>
    tpu.vector_store %arg12[%c20, %c0_12], %12 {strides = array<i32>} : memref<72x512xf32, #tpu.memory_space<vmem>>, vector<4x512xf32>,
    %c1_i32 = arith.constant 1 : i32
    %14 = tpu.dynamic_rotate %0 by %c1_i32 dim 1 : vector<4x512xf32>, i32 -> vector<4x512xf32>
    %c24 = arith.constant 24 : index
    %c0_13 = arith.constant 0 : index
    %15 = vector.load %arg12[%c24, %c0_13] : memref<72x512xf32, #tpu.memory_space<vmem>>, vector<4x512xf32>
    tpu.vector_store %arg12[%c24, %c0_13], %14 {strides = array<i32>} : memref<72x512xf32, #tpu.memory_space<vmem>>, vector<4x512xf32>,
    %c1_i32_14 = arith.constant 1 : i32
    %16 = tpu.dynamic_rotate %1 by %c1_i32_14 dim 1 : vector<4x512xf32>, i32 -> vector<4x512xf32>
    %c28 = arith.constant 28 : index
    %c0_15 = arith.constant 0 : index
    %17 = vector.load %arg12[%c28, %c0_15] : memref<72x512xf32, #tpu.memory_space<vmem>>, vector<4x512xf32>
    tpu.vector_store %arg12[%c28, %c0_15], %16 {strides = array<i32>} : memref<72x512xf32, #tpu.memory_space<vmem>>, vector<4x512xf32>,
    %c32 = arith.constant 32 : index
    %c0_16 = arith.constant 0 : index
    %18 = vector.load %arg12[%c32, %c0_16] : memref<72x512xf32, #tpu.memory_space<vmem>>, vector<4x512xf32>
    tpu.vector_store %arg12[%c32, %c0_16], %0 {strides = array<i32>} : memref<72x512xf32, #tpu.memory_space<vmem>>, vector<4x512xf32>,
    %c36 = arith.constant 36 : index
    %c0_17 = arith.constant 0 : index
    %19 = vector.load %arg12[%c36, %c0_17] : memref<72x512xf32, #tpu.memory_space<vmem>>, vector<4x512xf32>
    tpu.vector_store %arg12[%c36, %c0_17], %1 {strides = array<i32>} : memref<72x512xf32, #tpu.memory_space<vmem>>, vector<4x512xf32>,
    %c511_i32 = arith.constant 511 : i32
    %20 = tpu.dynamic_rotate %0 by %c511_i32 dim 1 : vector<4x512xf32>, i32 -> vector<4x512xf32>
    %c40 = arith.constant 40 : index
    %c0_18 = arith.constant 0 : index
    %21 = vector.load %arg12[%c40, %c0_18] : memref<72x512xf32, #tpu.memory_space<vmem>>, vector<4x512xf32>
    tpu.vector_store %arg12[%c40, %c0_18], %20 {strides = array<i32>} : memref<72x512xf32, #tpu.memory_space<vmem>>, vector<4x512xf32>,
    %c511_i32_19 = arith.constant 511 : i32
    %22 = tpu.dynamic_rotate %1 by %c511_i32_19 dim 1 : vector<4x512xf32>, i32 -> vector<4x512xf32>
    %c44 = arith.constant 44 : index
    %c0_20 = arith.constant 0 : index
    %23 = vector.load %arg12[%c44, %c0_20] : memref<72x512xf32, #tpu.memory_space<vmem>>, vector<4x512xf32>
    tpu.vector_store %arg12[%c44, %c0_20], %22 {strides = array<i32>} : memref<72x512xf32, #tpu.memory_space<vmem>>, vector<4x512xf32>,
    %c497_i32 = arith.constant 497 : i32
    %24 = tpu.dynamic_rotate %0 by %c497_i32 dim 1 : vector<4x512xf32>, i32 -> vector<4x512xf32>
    %c48 = arith.constant 48 : index
    %c0_21 = arith.constant 0 : index
    %25 = vector.load %arg12[%c48, %c0_21] : memref<72x512xf32, #tpu.memory_space<vmem>>, vector<4x512xf32>
    tpu.vector_store %arg12[%c48, %c0_21], %24 {strides = array<i32>} : memref<72x512xf32, #tpu.memory_space<vmem>>, vector<4x512xf32>,
    %c497_i32_22 = arith.constant 497 : i32
    %26 = tpu.dynamic_rotate %1 by %c497_i32_22 dim 1 : vector<4x512xf32>, i32 -> vector<4x512xf32>
    %c52 = arith.constant 52 : index
    %c0_23 = arith.constant 0 : index
    %27 = vector.load %arg12[%c52, %c0_23] : memref<72x512xf32, #tpu.memory_space<vmem>>, vector<4x512xf32>
    tpu.vector_store %arg12[%c52, %c0_23], %26 {strides = array<i32>} : memref<72x512xf32, #tpu.memory_space<vmem>>, vector<4x512xf32>,
    %c496_i32 = arith.constant 496 : i32
    %28 = tpu.dynamic_rotate %0 by %c496_i32 dim 1 : vector<4x512xf32>, i32 -> vector<4x512xf32>
    %c56 = arith.constant 56 : index
    %c0_24 = arith.constant 0 : index
    %29 = vector.load %arg12[%c56, %c0_24] : memref<72x512xf32, #tpu.memory_space<vmem>>, vector<4x512xf32>
    tpu.vector_store %arg12[%c56, %c0_24], %28 {strides = array<i32>} : memref<72x512xf32, #tpu.memory_space<vmem>>, vector<4x512xf32>,
    %c496_i32_25 = arith.constant 496 : i32
    %30 = tpu.dynamic_rotate %1 by %c496_i32_25 dim 1 : vector<4x512xf32>, i32 -> vector<4x512xf32>
    %c60 = arith.constant 60 : index
    %c0_26 = arith.constant 0 : index
    %31 = vector.load %arg12[%c60, %c0_26] : memref<72x512xf32, #tpu.memory_space<vmem>>, vector<4x512xf32>
    tpu.vector_store %arg12[%c60, %c0_26], %30 {strides = array<i32>} : memref<72x512xf32, #tpu.memory_space<vmem>>, vector<4x512xf32>,
    %c495_i32 = arith.constant 495 : i32
    %32 = tpu.dynamic_rotate %0 by %c495_i32 dim 1 : vector<4x512xf32>, i32 -> vector<4x512xf32>
    %c64 = arith.constant 64 : index
    %c0_27 = arith.constant 0 : index
    %33 = vector.load %arg12[%c64, %c0_27] : memref<72x512xf32, #tpu.memory_space<vmem>>, vector<4x512xf32>
    tpu.vector_store %arg12[%c64, %c0_27], %32 {strides = array<i32>} : memref<72x512xf32, #tpu.memory_space<vmem>>, vector<4x512xf32>,
    %c495_i32_28 = arith.constant 495 : i32
    %34 = tpu.dynamic_rotate %1 by %c495_i32_28 dim 1 : vector<4x512xf32>, i32 -> vector<4x512xf32>
    %c68 = arith.constant 68 : index
    %c0_29 = arith.constant 0 : index
    %35 = vector.load %arg12[%c68, %c0_29] : memref<72x512xf32, #tpu.memory_space<vmem>>, vector<4x512xf32>
    tpu.vector_store %arg12[%c68, %c0_29], %34 {strides = array<i32>} : memref<72x512xf32, #tpu.memory_space<vmem>>, vector<4x512xf32>,
    %c0_30 = arith.constant 0 : index
    %c0_31 = arith.constant 0 : index
    %36 = vector.load %arg12[%c0_30, %c0_31] : memref<72x512xf32, #tpu.memory_space<vmem>>, vector<72x512xf32>
    %c0_32 = arith.constant 0 : index
    %c0_33 = arith.constant 0 : index
    %37 = vector.load %arg3[%c0_32, %c0_33] : memref<72x512xf32, #tpu.memory_space<vmem>>, vector<72x512xf32>
    %38 = arith.mulf %36, %37 : vector<72x512xf32>
    %39 = arith.truncf %38 : vector<72x512xf32> to vector<72x512xbf16>
    %c0_34 = arith.constant 0 : index
    %c0_35 = arith.constant 0 : index
    %40 = vector.load %arg5[%c0_34, %c0_35] : memref<4x72xbf16, #tpu.memory_space<vmem>>, vector<4x72xbf16>
    %cst = arith.constant dense<0.000000e+00> : vector<4x512xf32>
    %41 = tpu.matmul %40, %39, %cst {dimension_numbers = #tpu.dot_dimension_numbers<[1], [0], [0], [1], [0, 0, 1, 1], [], []>} : vector<4x72xbf16>, vector<72x512xbf16>, vector<4x512xf32> -> vector<4x512xf32>
    %c0_36 = arith.constant 0 : index
    %c0_37 = arith.constant 0 : index
    %42 = vector.load %arg6[%c0_36, %c0_37] : memref<4x1xf32, #tpu.memory_space<vmem>>, vector<4x1xf32>
    %43 = vector.broadcast %42 : vector<4x1xf32> to vector<4x512xf32>
    %44 = arith.addf %41, %43 : vector<4x512xf32>
    %cst_38 = arith.constant 0.000000e+00 : f32
    %45 = vector.broadcast %cst_38 : f32 to vector<4x512xf32>
    %46 = arith.maximumf %44, %45 : vector<4x512xf32>
    %c17_i32_39 = arith.constant 17 : i32
    %47 = tpu.dynamic_rotate %46 by %c17_i32_39 dim 1 : vector<4x512xf32>, i32 -> vector<4x512xf32>
    %c0_40 = arith.constant 0 : index
    %c0_41 = arith.constant 0 : index
    %48 = vector.load %arg13[%c0_40, %c0_41] : memref<36x512xf32, #tpu.memory_space<vmem>>, vector<4x512xf32>
    tpu.vector_store %arg13[%c0_40, %c0_41], %47 {strides = array<i32>} : memref<36x512xf32, #tpu.memory_space<vmem>>, vector<4x512xf32>,
    %c16_i32_42 = arith.constant 16 : i32
    %49 = tpu.dynamic_rotate %46 by %c16_i32_42 dim 1 : vector<4x512xf32>, i32 -> vector<4x512xf32>
    %c4_43 = arith.constant 4 : index
    %c0_44 = arith.constant 0 : index
    %50 = vector.load %arg13[%c4_43, %c0_44] : memref<36x512xf32, #tpu.memory_space<vmem>>, vector<4x512xf32>
    tpu.vector_store %arg13[%c4_43, %c0_44], %49 {strides = array<i32>} : memref<36x512xf32, #tpu.memory_space<vmem>>, vector<4x512xf32>,
    %c15_i32_45 = arith.constant 15 : i32
    %51 = tpu.dynamic_rotate %46 by %c15_i32_45 dim 1 : vector<4x512xf32>, i32 -> vector<4x512xf32>
    %c8_46 = arith.constant 8 : index
    %c0_47 = arith.constant 0 : index
    %52 = vector.load %arg13[%c8_46, %c0_47] : memref<36x512xf32, #tpu.memory_space<vmem>>, vector<4x512xf32>
    tpu.vector_store %arg13[%c8_46, %c0_47], %51 {strides = array<i32>} : memref<36x512xf32, #tpu.memory_space<vmem>>, vector<4x512xf32>,
    %c1_i32_48 = arith.constant 1 : i32
    %53 = tpu.dynamic_rotate %46 by %c1_i32_48 dim 1 : vector<4x512xf32>, i32 -> vector<4x512xf32>
    %c12_49 = arith.constant 12 : index
    %c0_50 = arith.constant 0 : index
    %54 = vector.load %arg13[%c12_49, %c0_50] : memref<36x512xf32, #tpu.memory_space<vmem>>, vector<4x512xf32>
    tpu.vector_store %arg13[%c12_49, %c0_50], %53 {strides = array<i32>} : memref<36x512xf32, #tpu.memory_space<vmem>>, vector<4x512xf32>,
    %c16_51 = arith.constant 16 : index
    %c0_52 = arith.constant 0 : index
    %55 = vector.load %arg13[%c16_51, %c0_52] : memref<36x512xf32, #tpu.memory_space<vmem>>, vector<4x512xf32>
    tpu.vector_store %arg13[%c16_51, %c0_52], %46 {strides = array<i32>} : memref<36x512xf32, #tpu.memory_space<vmem>>, vector<4x512xf32>,
    %c511_i32_53 = arith.constant 511 : i32
    %56 = tpu.dynamic_rotate %46 by %c511_i32_53 dim 1 : vector<4x512xf32>, i32 -> vector<4x512xf32>
    %c20_54 = arith.constant 20 : index
    %c0_55 = arith.constant 0 : index
    %57 = vector.load %arg13[%c20_54, %c0_55] : memref<36x512xf32, #tpu.memory_space<vmem>>, vector<4x512xf32>
    tpu.vector_store %arg13[%c20_54, %c0_55], %56 {strides = array<i32>} : memref<36x512xf32, #tpu.memory_space<vmem>>, vector<4x512xf32>,
    %c497_i32_56 = arith.constant 497 : i32
    %58 = tpu.dynamic_rotate %46 by %c497_i32_56 dim 1 : vector<4x512xf32>, i32 -> vector<4x512xf32>
    %c24_57 = arith.constant 24 : index
    %c0_58 = arith.constant 0 : index
    %59 = vector.load %arg13[%c24_57, %c0_58] : memref<36x512xf32, #tpu.memory_space<vmem>>, vector<4x512xf32>
    tpu.vector_store %arg13[%c24_57, %c0_58], %58 {strides = array<i32>} : memref<36x512xf32, #tpu.memory_space<vmem>>, vector<4x512xf32>,
    %c496_i32_59 = arith.constant 496 : i32
    %60 = tpu.dynamic_rotate %46 by %c496_i32_59 dim 1 : vector<4x512xf32>, i32 -> vector<4x512xf32>
    %c28_60 = arith.constant 28 : index
    %c0_61 = arith.constant 0 : index
    %61 = vector.load %arg13[%c28_60, %c0_61] : memref<36x512xf32, #tpu.memory_space<vmem>>, vector<4x512xf32>
    tpu.vector_store %arg13[%c28_60, %c0_61], %60 {strides = array<i32>} : memref<36x512xf32, #tpu.memory_space<vmem>>, vector<4x512xf32>,
    %c495_i32_62 = arith.constant 495 : i32
    %62 = tpu.dynamic_rotate %46 by %c495_i32_62 dim 1 : vector<4x512xf32>, i32 -> vector<4x512xf32>
    %c32_63 = arith.constant 32 : index
    %c0_64 = arith.constant 0 : index
    %63 = vector.load %arg13[%c32_63, %c0_64] : memref<36x512xf32, #tpu.memory_space<vmem>>, vector<4x512xf32>
    tpu.vector_store %arg13[%c32_63, %c0_64], %62 {strides = array<i32>} : memref<36x512xf32, #tpu.memory_space<vmem>>, vector<4x512xf32>,
    %c0_65 = arith.constant 0 : index
    %c0_66 = arith.constant 0 : index
    %64 = vector.load %arg13[%c0_65, %c0_66] : memref<36x512xf32, #tpu.memory_space<vmem>>, vector<36x512xf32>
    %c0_67 = arith.constant 0 : index
    %c0_68 = arith.constant 0 : index
    %65 = vector.load %arg4[%c0_67, %c0_68] : memref<36x512xf32, #tpu.memory_space<vmem>>, vector<36x512xf32>
    %66 = arith.mulf %64, %65 : vector<36x512xf32>
    %67 = arith.truncf %66 : vector<36x512xf32> to vector<36x512xbf16>
    %c0_69 = arith.constant 0 : index
    %c0_70 = arith.constant 0 : index
    %68 = vector.load %arg7[%c0_69, %c0_70] : memref<2x36xbf16, #tpu.memory_space<vmem>>, vector<2x36xbf16>
    %cst_71 = arith.constant dense<0.000000e+00> : vector<2x512xf32>
    %69 = tpu.matmul %68, %67, %cst_71 {dimension_numbers = #tpu.dot_dimension_numbers<[1], [0], [0], [1], [0, 0, 1, 1], [], []>} : vector<2x36xbf16>, vector<36x512xbf16>, vector<2x512xf32> -> vector<2x512xf32>
    %c0_72 = arith.constant 0 : index
    %c0_73 = arith.constant 0 : index
    %70 = vector.load %arg8[%c0_72, %c0_73] : memref<2x1xf32, #tpu.memory_space<vmem>>, vector<2x1xf32>
    %71 = vector.broadcast %70 : vector<2x1xf32> to vector<2x512xf32>
    %72 = arith.addf %69, %71 : vector<2x512xf32>
    %cst_74 = arith.constant 0.000000e+00 : f32
    %73 = vector.broadcast %cst_74 : f32 to vector<2x512xf32>
    %74 = arith.maximumf %72, %73 : vector<2x512xf32>
    %c0_75 = arith.constant 0 : index
    %c0_76 = arith.constant 0 : index
    %75 = vector.load %arg9[%c0_75, %c0_76] : memref<2x1xf32, #tpu.memory_space<vmem>>, vector<2x1xf32>
    %76 = vector.broadcast %75 : vector<2x1xf32> to vector<2x512xf32>
    %77 = arith.mulf %74, %76 : vector<2x512xf32>
    %cst_77 = arith.constant dense<0.000000e+00> : vector<512xf32>
    %78 = vector.multi_reduction <add>, %77, %cst_77 [0] : vector<2x512xf32> to vector<512xf32>
    %79 = vector.shape_cast %78 : vector<512xf32> to vector<1x512xf32>
    %c0_78 = arith.constant 0 : index
    %c0_79 = arith.constant 0 : index
    %80 = memref.load %arg10[%c0_78, %c0_79] : memref<1x1xf32, #tpu.memory_space<smem>>
    %81 = vector.broadcast %80 : f32 to vector<1x512xf32>
    %82 = arith.addf %79, %81 : vector<1x512xf32>
    %83 = arith.negf %82 : vector<1x512xf32>
    %84 = math.exp %83 : vector<1x512xf32>
    %cst_80 = arith.constant 1.000000e+00 : f32
    %85 = vector.broadcast %cst_80 : f32 to vector<1x512xf32>
    %86 = arith.addf %85, %84 : vector<1x512xf32>
    %87 = arith.divf %85, %86 : vector<1x512xf32>
    %c0_81 = arith.constant 0 : index
    %c0_82 = arith.constant 0 : index
    %88 = vector.load %arg11[%c0_81, %c0_82] : memref<1x512xf32, #tpu.memory_space<vmem>>, vector<1x512xf32>
    tpu.vector_store %arg11[%c0_81, %c0_82], %87 {strides = array<i32>} : memref<1x512xf32, #tpu.memory_space<vmem>>, vector<1x512xf32>,
    return
  }
  func.func @transform_0(%arg0: i32) -> (i32, i32) {
    %c0_i32 = arith.constant 0 : i32
    %c0_i32_0 = arith.constant 0 : i32
    %c0_i32_1 = arith.constant 0 : i32
    return %c0_i32, %c0_i32_0 : i32, i32
  }
  func.func @transform_1(%arg0: i32) -> (i32, i32) {
    %c0_i32 = arith.constant 0 : i32
    %c0_i32_0 = arith.constant 0 : i32
    %c0_i32_1 = arith.constant 0 : i32
    return %c0_i32, %c0_i32_0 : i32, i32
  }
  func.func @transform_2(%arg0: i32) -> (i32, i32) {
    %c0_i32 = arith.constant 0 : i32
    %c0_i32_0 = arith.constant 0 : i32
    %c0_i32_1 = arith.constant 0 : i32
    return %c0_i32, %c0_i32_0 : i32, i32
  }
  func.func @transform_3(%arg0: i32) -> (i32, i32) {
    %c0_i32 = arith.constant 0 : i32
    %c0_i32_0 = arith.constant 0 : i32
    %c0_i32_1 = arith.constant 0 : i32
    return %c0_i32, %c0_i32_0 : i32, i32
  }
  func.func @transform_4(%arg0: i32) -> (i32, i32) {
    %c0_i32 = arith.constant 0 : i32
    %c0_i32_0 = arith.constant 0 : i32
    %c0_i32_1 = arith.constant 0 : i32
    return %c0_i32, %c0_i32_0 : i32, i32
  }
  func.func @transform_5(%arg0: i32) -> (i32, i32) {
    %c0_i32 = arith.constant 0 : i32
    %c0_i32_0 = arith.constant 0 : i32
    %c0_i32_1 = arith.constant 0 : i32
    return %c0_i32, %c0_i32_0 : i32, i32
  }
  func.func @transform_6(%arg0: i32) -> (i32, i32) {
    %c0_i32 = arith.constant 0 : i32
    %c0_i32_0 = arith.constant 0 : i32
    %c0_i32_1 = arith.constant 0 : i32
    return %c0_i32, %c0_i32_0 : i32, i32
  }
  func.func @transform_7(%arg0: i32) -> (i32, i32) {
    %c0_i32 = arith.constant 0 : i32
    %c0_i32_0 = arith.constant 0 : i32
    %c0_i32_1 = arith.constant 0 : i32
    return %c0_i32, %c0_i32_0 : i32, i32
  }
  func.func @transform_8(%arg0: i32) -> (i32, i32) {
    %c0_i32 = arith.constant 0 : i32
    %c0_i32_0 = arith.constant 0 : i32
    %c0_i32_1 = arith.constant 0 : i32
    return %c0_i32, %c0_i32_0 : i32, i32
  }
  func.func @transform_9(%arg0: i32) -> (i32, i32) {
    %c0_i32 = arith.constant 0 : i32
    %c0_i32_0 = arith.constant 0 : i32
    %c0_i32_1 = arith.constant 0 : i32
    return %c0_i32, %c0_i32_0 : i32, i32
  }
  func.func @transform_10(%arg0: i32) -> (i32, i32) {
    %c0_i32 = arith.constant 0 : i32
    %c0_i32_0 = arith.constant 0 : i32
    %c0_i32_1 = arith.constant 0 : i32
    return %c0_i32, %c0_i32_0 : i32, i32
  }
}

</mosaic_0001>

<bundles_post_ra>
// kernel: conv_sim_block.1
= control target key start
LH: loop header
LB: loop body
LE: loop exit
PB: predicated region body
PF: predicated region fallthrough
CT: control target
= control target key end

     0   :  { %s1179_s19 = smov 111   ;;  %s1181_s21 = smov 112   ;;  %v55_v10 = vlaneseq  ;;  %v1187_v29 = vmov 0   ;;  %vm566_vm3 = vcmask 1043456   ;;  %vm562_vm9 = vcmask 588800   ;;  %s1862_s1 = inlined_call_operand.vmem [shape: f32[4,512], index: 1, kind: input, shape index: {}]   ;;  %s1863_s0 = inlined_call_operand.vmem [shape: f32[4,512], index: 0, kind: input, shape index: {}]   ;;  %s1864_s2 = inlined_call_operand.vmem [shape: f32[72,512], index: 2, kind: input, shape index: {}]   ;;  %s1865_s5 = inlined_call_operand.vmem [shape: f32[4,1], index: 5, kind: input, shape index: {}]   ;;  %s1866_s4 = inlined_call_operand.vmem [shape: bf16[4,72], index: 4, kind: input, shape index: {}]   ;;  %s1867_s7 = inlined_call_operand.vmem [shape: f32[2,1], index: 7, kind: input, shape index: {}]   ;;  %s1868_s8 = inlined_call_operand.vmem [shape: f32[2,1], index: 8, kind: input, shape index: {}]   ;;  %s1869_s3 = inlined_call_operand.vmem [shape: f32[36,512], index: 3, kind: input, shape index: {}]   ;;  %s1870_s6 = inlined_call_operand.vmem [shape: bf16[2,36], index: 6, kind: input, shape index: {}]   ;;  %s1871_s9 = inlined_call_operand.<no memory space> [shape: f32[1,1], index: 9, kind: input, shape index: {}]   ;;  %s1872_s10 = inlined_call_operand.vmem [shape: f32[1,512], index: 10, kind: output, shape index: {}]  }
   0x1   :  { %v1247_v0 = vld [vmem:[%s1862_s1 + $0x8] sm:$0xff]  ;;  %v1252_v1 = vld [vmem:[%s1862_s1] sm:$0xff]  ;;  %s1182_s22 = smov 127   ;;  %s1183_s23 = smov 15   ;;  %611 = vmatprep.mubr.bf16.mxu0 %v1187_v29  ;;  %652 = vmatprep.mubr.bf16.mxu1 %v1187_v29  ;;  %v498_v44 = vld [vmem:[%s1864_s2 + $0x118] sm:$0xff]  ;;  %vm928_vm10 = vcmask 1041408  }
   0x2   :  { %v1257_v2 = vld [vmem:[%s1863_s0] sm:$0xff]  ;;  %403 = vrot.lane.b32.xlu1 %v1247_v0, %s1179_s19  ;;  %246 = vst [vmem:[#allocation2 + $0xa0] sm:$0xf0] %v1247_v0  ;;  %399 = vrot.lane.b32.xlu0 %v1252_v1, %s1179_s19  ;;  %244 = vst [vmem:[#allocation2 + $0xc8] sm:$0xf0] %v1252_v1  ;;  %v1267_v3 = vcombine.high %v1247_v0, %v1247_v0  ;;  %v1271_v4 = vcombine.high %v1252_v1, %v1252_v1  ;;  %v1281_v6 = vld [vmem:[%s1863_s0 + $0x8] sm:$0xff] }
   0x3   :  { %235 = vst [vmem:[#allocation2 + $0x20] sm:$0xf] %v1257_v2  ;;  %v1276_v5 = vcombine.high %v1257_v2, %v1257_v2  ;;  %237 = vst [vmem:[#allocation2 + $0x90] sm:$0xf] %v1281_v6  ;;  %v1286_v7 = vcombine.high %v1281_v6, %v1281_v6  ;;  %s1180_s0 = smov 113   ;;  %v239_v8 = vcombine.low %v1252_v1, %v1252_v1  ;;  %s1184_s24 = smov 1   ;;  %1155 = vset.pattern.permute.xlu0 %v1187_v29 }
   0x4   :  { %v240_v9 = vcombine.low %v1247_v0, %v1247_v0  ;;  %s1185_s25 = smov 17   ;;  %s1186_s26 = smov 16   ;;  %v1407_v11 = vand.u32 127, %v55_v10  ;;  %1156 = vset.pattern.permute.xlu1 %v1187_v29  ;;  %v495_v33 = vld [vmem:[%s1864_s2 + $0x100] sm:$0xff]  ;;  %v496_v41 = vld [vmem:[%s1864_s2 + $0x108] sm:$0xff]  ;;  %v497_v45 = vld [vmem:[%s1864_s2 + $0x110] sm:$0xff] }
   0x5   :  { %236 = vst [vmem:[#allocation2 + $0xc8] sm:$0xf] %v1276_v5  ;;  %238 = vst [vmem:[#allocation2 + $0xa0] sm:$0xf] %v1286_v7  ;;  %v556_v34 = vld [vmem:[%s1865_s5] sm:$0xf] }
   0x6   :  { %405 = vrot.lane.b32.xlu1 %v1267_v3, %s1179_s19  ;;  %401 = vrot.lane.b32.xlu0 %v1271_v4, %s1179_s19  ;;  %243 = vst [vmem:[#allocation2 + $0x20] sm:$0xf0] %v239_v8  ;;  %245 = vst [vmem:[#allocation2 + $0x90] sm:$0xf0] %v240_v9  ;;  %vm390_vm0 = vcmp.lt.s32.totalorder %v1407_v11, 111  ;;  %vm300_vm1 = vcmp.lt.s32.totalorder %v1407_v11, 113 }
   0x7   :  { %vm345_vm2 = vcmp.lt.s32.totalorder %v1407_v11, 112  ;;  %vm255_vm4 = vcmp.lt.s32.totalorder %v1407_v11, 127  ;;  %vm153_vm5 = vcmp.lt.s32.totalorder %v1407_v11, 15  ;;  %vm198_vm6 = vcmp.lt.s32.totalorder %v1407_v11, 1 }
   0x8   :  { %vm57_vm7 = vcmp.lt.s32.totalorder %v1407_v11, 17  ;;  %vm108_vm8 = vcmp.lt.s32.totalorder %v1407_v11, 16  ;;  %v868_v11 = vld [vmem:[%s1869_s3 + $0x18] sm:$0xff]  ;;  %vm924_vm11 = vcmask 293888   ;;  %vm1126_vm12 = vcmp.lt.s32.totalorder %v55_v10, 512 }
   0xa   :  { %382 = vrot.lane.b32.xlu0 %v1257_v2, %s1179_s19  ;;  %384 = vrot.lane.b32.xlu1 %v1276_v5, %s1179_s19 }
   0xe   :  { %386 = vrot.lane.b32.xlu0 %v1281_v6, %s1179_s19  ;;  %388 = vrot.lane.b32.xlu1 %v1286_v7, %s1179_s19 }
  0x12   :  { %309 = vrot.lane.b32.xlu0 %v1252_v1, %s1180_s0  ;;  %311 = vrot.lane.b32.xlu1 %v1271_v4, %s1180_s0 }
  0x16   :  { %313 = vrot.lane.b32.xlu0 %v1247_v0, %s1180_s0  ;;  %315 = vrot.lane.b32.xlu1 %v1267_v3, %s1180_s0 }
  0x1a   :  { %354 = vrot.lane.b32.xlu0 %v1252_v1, %s1181_s21  ;;  %356 = vrot.lane.b32.xlu1 %v1271_v4, %s1181_s21 }
  0x1e   :  { %358 = vrot.lane.b32.xlu0 %v1247_v0, %s1181_s21  ;;  %360 = vrot.lane.b32.xlu1 %v1267_v3, %s1181_s21 }
  0x22   :  { %292 = vrot.lane.b32.xlu0 %v1257_v2, %s1180_s0  ;;  %294 = vrot.lane.b32.xlu1 %v1276_v5, %s1180_s0 }
  0x26   :  { %296 = vrot.lane.b32.xlu0 %v1281_v6, %s1180_s0  ;;  %298 = vrot.lane.b32.xlu1 %v1286_v7, %s1180_s0 }
  0x2a   :  { %337 = vrot.lane.b32.xlu0 %v1257_v2, %s1181_s21  ;;  %339 = vrot.lane.b32.xlu1 %v1276_v5, %s1181_s21 }
  0x2e   :  { %341 = vrot.lane.b32.xlu0 %v1281_v6, %s1181_s21  ;;  %343 = vrot.lane.b32.xlu1 %v1286_v7, %s1181_s21 }
  0x32   :  { %264 = vrot.lane.b32.xlu0 %v1252_v1, %s1182_s22  ;;  %266 = vrot.lane.b32.xlu1 %v1271_v4, %s1182_s22 }
  0x36   :  { %268 = vrot.lane.b32.xlu0 %v1247_v0, %s1182_s22  ;;  %270 = vrot.lane.b32.xlu1 %v1267_v3, %s1182_s22 }
  0x3a   :  { %247 = vrot.lane.b32.xlu0 %v1257_v2, %s1182_s22  ;;  %249 = vrot.lane.b32.xlu1 %v1276_v5, %s1182_s22 }
  0x3e   :  { %251 = vrot.lane.b32.xlu0 %v1281_v6, %s1182_s22  ;;  %253 = vrot.lane.b32.xlu1 %v1286_v7, %s1182_s22 }
  0x42   :  { %162 = vrot.lane.b32.xlu0 %v1252_v1, %s1183_s23  ;;  %164 = vrot.lane.b32.xlu1 %v1271_v4, %s1183_s23 }
  0x46   :  { %166 = vrot.lane.b32.xlu0 %v1247_v0, %s1183_s23  ;;  %168 = vrot.lane.b32.xlu1 %v1267_v3, %s1183_s23 }
  0x4a   :  { %207 = vrot.lane.b32.xlu0 %v1252_v1, %s1184_s24  ;;  %209 = vrot.lane.b32.xlu1 %v1271_v4, %s1184_s24 }
  0x4e   :  { %211 = vrot.lane.b32.xlu0 %v1247_v0, %s1184_s24  ;;  %213 = vrot.lane.b32.xlu1 %v1267_v3, %s1184_s24 }
  0x52   :  { %145 = vrot.lane.b32.xlu0 %v1257_v2, %s1183_s23  ;;  %147 = vrot.lane.b32.xlu1 %v1276_v5, %s1183_s23 }
  0x56   :  { %149 = vrot.lane.b32.xlu0 %v1281_v6, %s1183_s23  ;;  %151 = vrot.lane.b32.xlu1 %v1286_v7, %s1183_s23 }
  0x5a   :  { %190 = vrot.lane.b32.xlu0 %v1257_v2, %s1184_s24  ;;  %192 = vrot.lane.b32.xlu1 %v1276_v5, %s1184_s24 }
  0x5e   :  { %194 = vrot.lane.b32.xlu0 %v1281_v6, %s1184_s24  ;;  %196 = vrot.lane.b32.xlu1 %v1286_v7, %s1184_s24 }
  0x62   :  { %72 = vrot.lane.b32.xlu0 %v1252_v1, %s1185_s25  ;;  %74 = vrot.lane.b32.xlu1 %v1271_v4, %s1185_s25 }
  0x66   :  { %76 = vrot.lane.b32.xlu0 %v1247_v0, %s1185_s25  ;;  %78 = vrot.lane.b32.xlu1 %v1267_v3, %s1185_s25 }
  0x6a   :  { %117 = vrot.lane.b32.xlu0 %v1252_v1, %s1186_s26  ;;  %119 = vrot.lane.b32.xlu1 %v1271_v4, %s1186_s26 }
  0x6e   :  { %121 = vrot.lane.b32.xlu0 %v1247_v0, %s1186_s26  ;;  %123 = vrot.lane.b32.xlu1 %v1267_v3, %s1186_s26 }
  0x72   :  { %47 = vrot.lane.b32.xlu0 %v1257_v2, %s1185_s25  ;;  %49 = vrot.lane.b32.xlu1 %v1276_v5, %s1185_s25 }
  0x74   :  { %v404_v12 = vpop.permute.xlu1 %403  ;;  %v400_v13 = vpop.permute.xlu0 %399 }
  0x76   :  { %51 = vrot.lane.b32.xlu0 %v1281_v6, %s1185_s25  ;;  %53 = vrot.lane.b32.xlu1 %v1286_v7, %s1185_s25 }
  0x78   :  { %v406_v14 = vpop.permute.xlu1 %405  ;;  %v402_v15 = vpop.permute.xlu0 %401 }
  0x79   :  { %v407_v16 = vsel %vm390_vm0, %v404_v12, %v406_v14  ;;  %v410_v17 = vsel %vm390_vm0, %v406_v14, %v400_v13  ;;  %v408_v18 = vsel %vm390_vm0, %v402_v15, %v404_v12  ;;  %v409_v19 = vsel %vm390_vm0, %v400_v13, %v402_v15 }
  0x7a   :  { %v417_v20 = vrot.slane %v407_v16, 4  ;;  %v418_v21 = vrot.slane %v410_v17, 4  ;;  %v415_v22 = vrot.slane %v409_v19, 4  ;;  %v416_v23 = vrot.slane %v408_v18, 4  ;;  %100 = vrot.lane.b32.xlu0 %v1257_v2, %s1186_s26  ;;  %102 = vrot.lane.b32.xlu1 %v1276_v5, %s1186_s26 }
  0x7c   :  { %425 = vst [vmem:[#allocation2 + $0x40] sm:$0xf0] %v417_v20  ;;  %426 = vst [vmem:[#allocation2 + $0xe8] sm:$0xf0] %v418_v21  ;;  %v383_v24 = vpop.permute.xlu0 %382  ;;  %v385_v25 = vpop.permute.xlu1 %384 }
  0x7d   :  { %423 = vst [vmem:[#allocation2 + $0x100] sm:$0xf0] %v415_v22  ;;  %424 = vst [vmem:[#allocation2] sm:$0xf0] %v416_v23  ;;  %v393_v26 = vsel %vm390_vm0, %v383_v24, %v385_v25 }
  0x7e   :  { %395 = vst [vmem:[#allocation2 + $0x100] sm:$0xf] %v393_v26  ;;  %104 = vrot.lane.b32.xlu0 %v1281_v6, %s1186_s26  ;;  %106 = vrot.lane.b32.xlu1 %v1286_v7, %s1186_s26 }
  0x80   :  { %v387_v27 = vpop.permute.xlu0 %386  ;;  %v389_v28 = vpop.permute.xlu1 %388 }
  0x81   :  { %v392_v30 = vsel %vm390_vm0, %v385_v25, %v387_v27  ;;  %v391_v31 = vsel %vm390_vm0, %v387_v27, %v389_v28  ;;  %v394_v32 = vsel %vm390_vm0, %v389_v28, %v383_v24 }
  0x82   :  { %396 = vst [vmem:[#allocation2] sm:$0xf] %v392_v30  ;;  %397 = vst [vmem:[#allocation2 + $0x40] sm:$0xf] %v391_v31  ;;  %559 = vperm.xlu0 %1155, %v556_v34  }
  0x83   :  { %398 = vst [vmem:[#allocation2 + $0xe8] sm:$0xf] %v394_v32 }
  0x84   :  { %v310_v35 = vpop.permute.xlu0 %309  ;;  %v312_v36 = vpop.permute.xlu1 %311 }
  0x85   :  { %v319_v37 = vsel %vm300_vm1, %v310_v35, %v312_v36  ;;  %v459_v38 = vld [vmem:[#allocation2 + $0x100] sm:$0xff] }
  0x86   :  { %v325_v39 = vrot.slane %v319_v37, 4  ;;  %v531_v40 = vmul.f32 %v495_v33, %v459_v38  ;;  %v487_v33 = vld [vmem:[%s1864_s2 + $0xc0] sm:$0xff] }
  0x88   :  { %333 = vst [vmem:[#allocation2 + $0xa8] sm:$0xf0] %v325_v39  ;;  %v314_v42 = vpop.permute.xlu0 %313  ;;  %v316_v43 = vpop.permute.xlu1 %315  ;;  %v551_v51 = vpack.c.bf16 %v531_v40, %v531_v40  ;;  %v490_v39 = vld [vmem:[%s1864_s2 + $0xd8] sm:$0xff] }
  0x89   :  { %v318_v46 = vsel %vm300_vm1, %v312_v36, %v314_v42  ;;  %v317_v47 = vsel %vm300_vm1, %v314_v42, %v316_v43  ;;  %v320_v48 = vsel %vm300_vm1, %v316_v43, %v310_v35  ;;  %v460_v49 = vld [vmem:[#allocation2] sm:$0xff]  ;;  %v488_v36 = vld [vmem:[%s1864_s2 + $0xc8] sm:$0xff]  ;;  %v494_v43 = vld [vmem:[%s1864_s2 + $0xf8] sm:$0xff] }
  0x8a   :  { %v462_v50 = vld [vmem:[#allocation2 + $0xe8] sm:$0xff]  ;;  %v461_v52 = vld [vmem:[#allocation2 + $0x40] sm:$0xff]  ;;  %v326_v53 = vrot.slane %v318_v46, 4  ;;  %v327_v54 = vrot.slane %v317_v47, 4  ;;  %v328_v55 = vrot.slane %v320_v48, 4  ;;  %v532_v56 = vmul.f32 %v496_v41, %v460_v49 }
  0x8b   :  { %v534_v57 = vmul.f32 %v498_v44, %v462_v50  ;;  %v533_v58 = vmul.f32 %v497_v45, %v461_v52  ;;  %v568_v2 = vsel %vm566_vm3, %v551_v51, 0  ;;  %v491_v41 = vld [vmem:[%s1864_s2 + $0xe0] sm:$0xff]  ;;  %v492_v42 = vld [vmem:[%s1864_s2 + $0xe8] sm:$0xff]  ;;  %v489_v44 = vld [vmem:[%s1864_s2 + $0xd0] sm:$0xff] }
  0x8c   :  { %334 = vst [vmem:[#allocation2 + $0x88] sm:$0xf0] %v326_v53  ;;  %335 = vst [vmem:[#allocation2 + $0xd8] sm:$0xf0] %v327_v54  ;;  %v355_v59 = vpop.permute.xlu0 %354  ;;  %v357_v60 = vpop.permute.xlu1 %356  ;;  %v552_v61 = vpack.c.bf16 %v532_v56, %v532_v56  ;;  %v493_v51 = vld [vmem:[%s1864_s2 + $0xf0] sm:$0xff] }
  0x8d   :  { %336 = vst [vmem:[#allocation2 + $0xc0] sm:$0xf0] %v328_v55  ;;  %v364_v62 = vsel %vm345_vm2, %v355_v59, %v357_v60  ;;  %v554_v63 = vpack.c.bf16 %v534_v57, %v534_v57  ;;  %v553_v0 = vpack.c.bf16 %v533_v58, %v533_v58 }
  0x8e   :  { %v370_v1 = vrot.slane %v364_v62, 4  ;;  %1133 = vmatprep.subr.msk.bf16.mxu0 %vm566_vm3, %v552_v61 }
  0x8f   :  { %1135 = vmatprep.subr.msk.bf16.mxu1 %vm566_vm3, %v554_v63  ;;  %586 = vmatpush1.bf16.msra.mxu0 %v568_v2  ;;  %v574_v3 = vsel %vm566_vm3, %v553_v0, 0 }
  0x90   :  { %378 = vst [vmem:[#allocation2 + $0x50] sm:$0xf0] %v370_v1  ;;  %627 = vmatpush1.bf16.msra.mxu1 %v574_v3  ;;  %v359_v4 = vpop.permute.xlu0 %358  ;;  %v361_v5 = vpop.permute.xlu1 %360 }
  0x91   :  { %v363_v6 = vsel %vm345_vm2, %v357_v60, %v359_v4  ;;  %v362_v7 = vsel %vm345_vm2, %v359_v4, %v361_v5  ;;  %v365_v8 = vsel %vm345_vm2, %v361_v5, %v355_v59 }
  0x92   :  { %v371_v9 = vrot.slane %v363_v6, 4  ;;  %v372_v12 = vrot.slane %v362_v7, 4  ;;  %v373_v13 = vrot.slane %v365_v8, 4 }
  0x94   :  { %379 = vst [vmem:[#allocation2 + $0xf0] sm:$0xf0] %v371_v9  ;;  %380 = vst [vmem:[#allocation2 + $0xb8] sm:$0xf0] %v372_v12  ;;  %v293_v14 = vpop.permute.xlu0 %292  ;;  %v295_v15 = vpop.permute.xlu1 %294 }
  0x95   :  { %381 = vst [vmem:[#allocation2 + $0x28] sm:$0xf0] %v373_v13  ;;  %v303_v16 = vsel %vm300_vm1, %v293_v14, %v295_v15 }
  0x96   :  { %305 = vst [vmem:[#allocation2 + $0xa8] sm:$0xf] %v303_v16 }
  0x98   :  { %v297_v17 = vpop.permute.xlu0 %296  ;;  %v299_v18 = vpop.permute.xlu1 %298 }
  0x99   :  { %v302_v19 = vsel %vm300_vm1, %v295_v15, %v297_v17  ;;  %v301_v20 = vsel %vm300_vm1, %v297_v17, %v299_v18  ;;  %v304_v21 = vsel %vm300_vm1, %v299_v18, %v293_v14  ;;  %v443_v17 = vld [vmem:[#allocation2 + $0x20] sm:$0xff] }
  0x9a   :  { %306 = vst [vmem:[#allocation2 + $0x88] sm:$0xf] %v302_v19  ;;  %307 = vst [vmem:[#allocation2 + $0xd8] sm:$0xf] %v301_v20  ;;  %v479_v18 = vld [vmem:[%s1864_s2 + $0x80] sm:$0xff] }
  0x9b   :  { %308 = vst [vmem:[#allocation2 + $0xc0] sm:$0xf] %v304_v21  ;;  %v444_v21 = vld [vmem:[#allocation2 + $0xc8] sm:$0xff] }
  0x9c   :  { %v338_v22 = vpop.permute.xlu0 %337  ;;  %v340_v23 = vpop.permute.xlu1 %339 }
  0x9d   :  { %v348_v24 = vsel %vm345_vm2, %v338_v22, %v340_v23  ;;  %v451_v37 = vld [vmem:[#allocation2 + $0xa8] sm:$0xff] }
  0x9e   :  { %350 = vst [vmem:[#allocation2 + $0x50] sm:$0xf] %v348_v24  ;;  %v523_v49 = vmul.f32 %v487_v33, %v451_v37  ;;  %v515_v33 = vmul.f32 %v479_v18, %v443_v17  ;;  %v486_v37 = vld [vmem:[%s1864_s2 + $0xb8] sm:$0xff] }
  0xa0   :  { %v342_v25 = vpop.permute.xlu0 %341  ;;  %v344_v26 = vpop.permute.xlu1 %343 }
  0xa1   :  { %v347_v27 = vsel %vm345_vm2, %v340_v23, %v342_v25  ;;  %v346_v28 = vsel %vm345_vm2, %v342_v25, %v344_v26  ;;  %v349_v30 = vsel %vm345_vm2, %v344_v26, %v338_v22  ;;  %v452_v35 = vld [vmem:[#allocation2 + $0x88] sm:$0xff]  ;;  %v453_v50 = vld [vmem:[#allocation2 + $0xd8] sm:$0xff]  ;;  %v446_v23 = vld [vmem:[#allocation2 + $0xa0] sm:$0xff] }
  0xa2   :  { %351 = vst [vmem:[#allocation2 + $0xf0] sm:$0xf] %v347_v27  ;;  %352 = vst [vmem:[#allocation2 + $0xb8] sm:$0xf] %v346_v28  ;;  %v524_v47 = vmul.f32 %v488_v36, %v452_v35  ;;  %v454_v48 = vld [vmem:[#allocation2 + $0xc0] sm:$0xff]  ;;  %v525_v1 = vmul.f32 %v489_v44, %v453_v50  ;;  %v480_v22 = vld [vmem:[%s1864_s2 + $0x88] sm:$0xff] }
  0xa3   :  { %353 = vst [vmem:[#allocation2 + $0x28] sm:$0xf] %v349_v30  ;;  %v526_v63 = vmul.f32 %v490_v39, %v454_v48  ;;  %v482_v25 = vld [vmem:[%s1864_s2 + $0x98] sm:$0xff]  ;;  %v445_v26 = vld [vmem:[#allocation2 + $0x90] sm:$0xff]  ;;  %v516_v36 = vmul.f32 %v480_v22, %v444_v21 }
  0xa4   :  { %v265_v31 = vpop.permute.xlu0 %264  ;;  %v267_v32 = vpop.permute.xlu1 %266  ;;  %v481_v27 = vld [vmem:[%s1864_s2 + $0x90] sm:$0xff] }
  0xa5   :  { %v274_v34 = vsel %vm255_vm4, %v265_v31, %v267_v32  ;;  %v455_v40 = vld [vmem:[#allocation2 + $0x50] sm:$0xff] }
  0xa6   :  { %v280_v38 = vrot.slane %v274_v34, 4  ;;  %v527_v57 = vmul.f32 %v491_v41, %v455_v40  ;;  %v485_v39 = vld [vmem:[%s1864_s2 + $0xb0] sm:$0xff]  ;;  %v517_v40 = vmul.f32 %v481_v27, %v445_v26  ;;  %v476_v26 = vld [vmem:[%s1864_s2 + $0x68] sm:$0xff] }
  0xa8   :  { %288 = vst [vmem:[#allocation2 + $0x70] sm:$0xf0] %v280_v38  ;;  %v269_v45 = vpop.permute.xlu0 %268  ;;  %v271_v46 = vpop.permute.xlu1 %270  ;;  %v547_v8 = vpack.c.bf16 %v527_v57, %v523_v49  ;;  %v518_v38 = vmul.f32 %v482_v25, %v446_v23  ;;  %v472_v25 = vld [vmem:[%s1864_s2 + $0x48] sm:$0xff] }
  0xa9   :  { %v273_v52 = vsel %vm255_vm4, %v267_v32, %v269_v45  ;;  %v272_v53 = vsel %vm255_vm4, %v269_v45, %v271_v46  ;;  %v275_v54 = vsel %vm255_vm4, %v271_v46, %v265_v31  ;;  %v456_v55 = vld [vmem:[#allocation2 + $0xf0] sm:$0xff]  ;;  %v457_v58 = vld [vmem:[#allocation2 + $0xb8] sm:$0xff]  ;;  %v483_v31 = vld [vmem:[%s1864_s2 + $0xa0] sm:$0xff] }
  0xaa   :  { %v458_v56 = vld [vmem:[#allocation2 + $0x28] sm:$0xff]  ;;  %v281_v59 = vrot.slane %v273_v52, 4  ;;  %v282_v60 = vrot.slane %v272_v53, 4  ;;  %v283_v61 = vrot.slane %v275_v54, 4  ;;  %v528_v62 = vmul.f32 %v492_v42, %v456_v55 }
  0xab   :  { %v530_v0 = vmul.f32 %v494_v43, %v458_v56  ;;  %v529_v2 = vmul.f32 %v493_v51, %v457_v58  ;;  %v484_v32 = vld [vmem:[%s1864_s2 + $0xa8] sm:$0xff] }
  0xac   :  { %289 = vst [vmem:[#allocation2 + $0x58] sm:$0xf0] %v281_v59  ;;  %290 = vst [vmem:[#allocation2 + $0xe0] sm:$0xf0] %v282_v60  ;;  %v248_v3 = vpop.permute.xlu0 %247  ;;  %v250_v4 = vpop.permute.xlu1 %249  ;;  %v548_v5 = vpack.c.bf16 %v528_v62, %v524_v47 }
  0xad   :  { %291 = vst [vmem:[#allocation2 + $0x60] sm:$0xf0] %v283_v61  ;;  %v258_v6 = vsel %vm255_vm4, %v248_v3, %v250_v4  ;;  %v550_v7 = vpack.c.bf16 %v530_v0, %v526_v63  ;;  %v549_v9 = vpack.c.bf16 %v529_v2, %v525_v1 }
  0xae   :  { %260 = vst [vmem:[#allocation2 + $0x70] sm:$0xf] %v258_v6  ;;  %587 = vmatprep.subr.bf16.mxu0 %v548_v5 }
  0xaf   :  { %628 = vmatprep.subr.bf16.mxu1 %v550_v7  ;;  %588 = vmatpush1.bf16.msra.mxu0 %v547_v8 }
  0xb0   :  { %629 = vmatpush1.bf16.msra.mxu1 %v549_v9  ;;  %v252_v12 = vpop.permute.xlu0 %251  ;;  %v254_v13 = vpop.permute.xlu1 %253 }
  0xb1   :  { %v257_v14 = vsel %vm255_vm4, %v250_v4, %v252_v12  ;;  %v256_v15 = vsel %vm255_vm4, %v252_v12, %v254_v13  ;;  %v259_v16 = vsel %vm255_vm4, %v254_v13, %v248_v3 }
  0xb2   :  { %261 = vst [vmem:[#allocation2 + $0x58] sm:$0xf] %v257_v14  ;;  %262 = vst [vmem:[#allocation2 + $0xe0] sm:$0xf] %v256_v15 }
  0xb3   :  { %263 = vst [vmem:[#allocation2 + $0x60] sm:$0xf] %v259_v16 }
  0xb4   :  { %v163_v19 = vpop.permute.xlu0 %162  ;;  %v165_v20 = vpop.permute.xlu1 %164 }
  0xb5   :  { %v172_v24 = vsel %vm153_vm5, %v163_v19, %v165_v20  ;;  %v447_v30 = vld [vmem:[#allocation2 + $0x70] sm:$0xff] }
  0xb6   :  { %v179_v28 = vrot.slane %v172_v24, 4  ;;  %v519_v46 = vmul.f32 %v483_v31, %v447_v30 }
  0xb8   :  { %187 = vst [vmem:[#allocation2 + $0x110] sm:$0xf0] %v179_v28  ;;  %v167_v34 = vpop.permute.xlu0 %166  ;;  %v169_v35 = vpop.permute.xlu1 %168  ;;  %v543_v59 = vpack.c.bf16 %v519_v46, %v515_v33  ;;  %v477_v46 = vld [vmem:[%s1864_s2 + $0x70] sm:$0xff] }
  0xb9   :  { %v171_v41 = vsel %vm153_vm5, %v165_v20, %v167_v34  ;;  %v170_v42 = vsel %vm153_vm5, %v167_v34, %v169_v35  ;;  %v173_v43 = vsel %vm153_vm5, %v169_v35, %v163_v19  ;;  %v448_v44 = vld [vmem:[#allocation2 + $0x58] sm:$0xff]  ;;  %v449_v47 = vld [vmem:[#allocation2 + $0xe0] sm:$0xff] }
  0xba   :  { %v450_v45 = vld [vmem:[#allocation2 + $0x60] sm:$0xff]  ;;  %v180_v48 = vrot.slane %v171_v41, 4  ;;  %v178_v49 = vrot.slane %v173_v43, 4  ;;  %v181_v50 = vrot.slane %v170_v42, 4  ;;  %v520_v51 = vmul.f32 %v484_v32, %v448_v44 }
  0xbb   :  { %v522_v52 = vmul.f32 %v486_v37, %v450_v45  ;;  %v521_v53 = vmul.f32 %v485_v39, %v449_v47  ;;  %v474_v37 = vld [vmem:[%s1864_s2 + $0x58] sm:$0xff] }
  0xbc   :  { %188 = vst [vmem:[#allocation2 + $0x118] sm:$0xf0] %v180_v48  ;;  %186 = vst [vmem:[#allocation2 + $0x80] sm:$0xf0] %v178_v49  ;;  %v208_v54 = vpop.permute.xlu0 %207  ;;  %v210_v55 = vpop.permute.xlu1 %209  ;;  %v544_v56 = vpack.c.bf16 %v520_v51, %v516_v36  ;;  %v471_v36 = vld [vmem:[%s1864_s2 + $0x40] sm:$0xff]  ;;  %v478_v39 = vld [vmem:[%s1864_s2 + $0x78] sm:$0xff] }
  0xbd   :  { %189 = vst [vmem:[#allocation2 + $0x98] sm:$0xf0] %v181_v50  ;;  %v217_v57 = vsel %vm198_vm6, %v208_v54, %v210_v55  ;;  %v546_v58 = vpack.c.bf16 %v522_v52, %v518_v38  ;;  %v545_v60 = vpack.c.bf16 %v521_v53, %v517_v40  ;;  %v475_v38 = vld [vmem:[%s1864_s2 + $0x60] sm:$0xff]  ;;  %v473_v40 = vld [vmem:[%s1864_s2 + $0x50] sm:$0xff] }
  0xbe   :  { %v224_v61 = vrot.slane %v217_v57, 4  ;;  %589 = vmatprep.subr.bf16.mxu0 %v544_v56 }
  0xbf   :  { %630 = vmatprep.subr.bf16.mxu1 %v546_v58  ;;  %590 = vmatpush1.bf16.msra.mxu0 %v543_v59 }
  0xc0   :  { %232 = vst [vmem:[#allocation2 + $0x38] sm:$0xf0] %v224_v61  ;;  %631 = vmatpush1.bf16.msra.mxu1 %v545_v60  ;;  %v212_v62 = vpop.permute.xlu0 %211  ;;  %v214_v63 = vpop.permute.xlu1 %213 }
  0xc1   :  { %v216_v0 = vsel %vm198_vm6, %v210_v55, %v212_v62  ;;  %v215_v1 = vsel %vm198_vm6, %v212_v62, %v214_v63  ;;  %v218_v2 = vsel %vm198_vm6, %v214_v63, %v208_v54 }
  0xc2   :  { %v225_v3 = vrot.slane %v216_v0, 4  ;;  %v223_v4 = vrot.slane %v218_v2, 4  ;;  %v226_v5 = vrot.slane %v215_v1, 4 }
  0xc4   :  { %233 = vst [vmem:[#allocation2 + $0x8] sm:$0xf0] %v225_v3  ;;  %231 = vst [vmem:[#allocation2 + $0xf8] sm:$0xf0] %v223_v4  ;;  %v146_v6 = vpop.permute.xlu0 %145  ;;  %v148_v7 = vpop.permute.xlu1 %147 }
  0xc5   :  { %234 = vst [vmem:[#allocation2 + $0x78] sm:$0xf0] %v226_v5  ;;  %v156_v8 = vsel %vm153_vm5, %v146_v6, %v148_v7 }
  0xc6   :  { %159 = vst [vmem:[#allocation2 + $0x110] sm:$0xf] %v156_v8 }
  0xc8   :  { %v150_v9 = vpop.permute.xlu0 %149  ;;  %v152_v12 = vpop.permute.xlu1 %151 }
  0xc9   :  { %v155_v13 = vsel %vm153_vm5, %v148_v7, %v150_v9  ;;  %v154_v14 = vsel %vm153_vm5, %v150_v9, %v152_v12  ;;  %v157_v15 = vsel %vm153_vm5, %v152_v12, %v146_v6 }
  0xca   :  { %160 = vst [vmem:[#allocation2 + $0x118] sm:$0xf] %v155_v13  ;;  %158 = vst [vmem:[#allocation2 + $0x80] sm:$0xf] %v157_v15 }
  0xcb   :  { %161 = vst [vmem:[#allocation2 + $0x98] sm:$0xf] %v154_v14 }
  0xcc   :  { %v191_v16 = vpop.permute.xlu0 %190  ;;  %v193_v17 = vpop.permute.xlu1 %192 }
  0xcd   :  { %v201_v18 = vsel %vm198_vm6, %v191_v16, %v193_v17  ;;  %v436_v24 = vld [vmem:[#allocation2 + $0x110] sm:$0xff] }
  0xce   :  { %204 = vst [vmem:[#allocation2 + $0x38] sm:$0xf] %v201_v18  ;;  %v508_v33 = vmul.f32 %v472_v25, %v436_v24 }
  0xd0   :  { %v195_v19 = vpop.permute.xlu0 %194  ;;  %v197_v20 = vpop.permute.xlu1 %196 }
  0xd1   :  { %v200_v21 = vsel %vm198_vm6, %v193_v17, %v195_v19  ;;  %v199_v22 = vsel %vm198_vm6, %v195_v19, %v197_v20  ;;  %v202_v23 = vsel %vm198_vm6, %v197_v20, %v191_v16  ;;  %v435_v35 = vld [vmem:[#allocation2 + $0x80] sm:$0xff]  ;;  %v437_v45 = vld [vmem:[#allocation2 + $0x118] sm:$0xff] }
  0xd2   :  { %205 = vst [vmem:[#allocation2 + $0x8] sm:$0xf] %v200_v21  ;;  %203 = vst [vmem:[#allocation2 + $0xf8] sm:$0xf] %v202_v23  ;;  %v438_v44 = vld [vmem:[#allocation2 + $0x98] sm:$0xff]  ;;  %v507_v51 = vmul.f32 %v471_v36, %v435_v35  ;;  %v509_v60 = vmul.f32 %v473_v40, %v437_v45  ;;  %v463_v35 = vld [vmem:[%s1864_s2] sm:$0xff] }
  0xd3   :  { %206 = vst [vmem:[#allocation2 + $0x78] sm:$0xf] %v199_v22  ;;  %v510_v58 = vmul.f32 %v474_v37, %v438_v44  ;;  %v466_v37 = vld [vmem:[%s1864_s2 + $0x18] sm:$0xff] }
  0xd4   :  { %v73_v27 = vpop.permute.xlu0 %72  ;;  %v75_v28 = vpop.permute.xlu1 %74  ;;  %v470_v44 = vld [vmem:[%s1864_s2 + $0x38] sm:$0xff] }
  0xd5   :  { %v82_v30 = vsel %vm57_vm7, %v73_v27, %v75_v28  ;;  %v440_v31 = vld [vmem:[#allocation2 + $0x38] sm:$0xff] }
  0xd6   :  { %v89_v32 = vrot.slane %v82_v30, 4  ;;  %v512_v34 = vmul.f32 %v476_v26, %v440_v31 }
  0xd8   :  { %97 = vst [vmem:[#allocation2 + $0xd0] sm:$0xf0] %v89_v32  ;;  %v77_v41 = vpop.permute.xlu0 %76  ;;  %v79_v42 = vpop.permute.xlu1 %78  ;;  %v540_v43 = vpack.c.bf16 %v512_v34, %v508_v33  ;;  %v464_v33 = vld [vmem:[%s1864_s2 + $0x8] sm:$0xff] }
  0xd9   :  { %v81_v47 = vsel %vm57_vm7, %v75_v28, %v77_v41  ;;  %v80_v48 = vsel %vm57_vm7, %v77_v41, %v79_v42  ;;  %v83_v49 = vsel %vm57_vm7, %v79_v42, %v73_v27  ;;  %v439_v50 = vld [vmem:[#allocation2 + $0xf8] sm:$0xff]  ;;  %v441_v53 = vld [vmem:[#allocation2 + $0x8] sm:$0xff]  ;;  %v467_v42 = vld [vmem:[%s1864_s2 + $0x20] sm:$0xff] }
  0xda   :  { %v442_v52 = vld [vmem:[#allocation2 + $0x78] sm:$0xff]  ;;  %v90_v54 = vrot.slane %v81_v47, 4  ;;  %v88_v55 = vrot.slane %v83_v49, 4  ;;  %v91_v56 = vrot.slane %v80_v48, 4  ;;  %591 = vmatprep.subr.bf16.mxu0 %v540_v43  ;;  %v511_v57 = vmul.f32 %v475_v38, %v439_v50  ;;  %v468_v34 = vld [vmem:[%s1864_s2 + $0x28] sm:$0xff]  ;;  %v465_v38 = vld [vmem:[%s1864_s2 + $0x10] sm:$0xff] }
  0xdb   :  { %v514_v59 = vmul.f32 %v478_v39, %v442_v52  ;;  %v513_v61 = vmul.f32 %v477_v46, %v441_v53  ;;  %v469_v46 = vld [vmem:[%s1864_s2 + $0x30] sm:$0xff] }
  0xdc   :  { %98 = vst [vmem:[#allocation2 + $0x10] sm:$0xf0] %v90_v54  ;;  %96 = vst [vmem:[#allocation2 + $0xb0] sm:$0xf0] %v88_v55  ;;  %v118_v62 = vpop.permute.xlu0 %117  ;;  %v120_v63 = vpop.permute.xlu1 %119  ;;  %v539_v0 = vpack.c.bf16 %v511_v57, %v507_v51 }
  0xdd   :  { %99 = vst [vmem:[#allocation2 + $0x48] sm:$0xf0] %v91_v56  ;;  %v127_v1 = vsel %vm108_vm8, %v118_v62, %v120_v63  ;;  %v542_v2 = vpack.c.bf16 %v514_v59, %v510_v58  ;;  %v541_v3 = vpack.c.bf16 %v513_v61, %v509_v60  ;;  %v555_v60 = vld [vmem:[%s1866_s4] sm:$0x3] }
  0xde   :  { %v134_v4 = vrot.slane %v127_v1, 4  ;;  %592 = vmatpush1.bf16.msra.mxu0 %v539_v0 }
  0xdf   :  { %632 = vmatprep.subr.bf16.mxu1 %v542_v2 }
  0xe0   :  { %142 = vst [vmem:[#allocation2 + $0x68] sm:$0xf0] %v134_v4  ;;  %633 = vmatpush1.bf16.msra.mxu1 %v541_v3  ;;  %v122_v5 = vpop.permute.xlu0 %121  ;;  %v124_v6 = vpop.permute.xlu1 %123 }
  0xe1   :  { %v126_v7 = vsel %vm108_vm8, %v120_v63, %v122_v5  ;;  %v125_v8 = vsel %vm108_vm8, %v122_v5, %v124_v6  ;;  %v128_v9 = vsel %vm108_vm8, %v124_v6, %v118_v62 }
  0xe2   :  { %v135_v12 = vrot.slane %v126_v7, 4  ;;  %v133_v13 = vrot.slane %v128_v9, 4  ;;  %v136_v14 = vrot.slane %v125_v8, 4 }
  0xe4   :  { %143 = vst [vmem:[#allocation2 + $0x30] sm:$0xf0] %v135_v12  ;;  %141 = vst [vmem:[#allocation2 + $0x108] sm:$0xf0] %v133_v13  ;;  %v48_v15 = vpop.permute.xlu0 %47  ;;  %v50_v16 = vpop.permute.xlu1 %49 }
  0xe5   :  { %144 = vst [vmem:[#allocation2 + $0x18] sm:$0xf0] %v136_v14  ;;  %v60_v17 = vsel %vm57_vm7, %v48_v15, %v50_v16 }
  0xe6   :  { %63 = vst [vmem:[#allocation2 + $0xd0] sm:$0xf] %v60_v17 }
  0xe8   :  { %v52_v18 = vpop.permute.xlu0 %51  ;;  %v54_v19 = vpop.permute.xlu1 %53 }
  0xe9   :  { %v59_v20 = vsel %vm57_vm7, %v50_v16, %v52_v18  ;;  %v58_v21 = vsel %vm57_vm7, %v52_v18, %v54_v19  ;;  %v61_v22 = vsel %vm57_vm7, %v54_v19, %v48_v15  ;;  %v918_v15 = vld [vmem:[%s1867_s7] sm:$0x3] }
  0xea   :  { %64 = vst [vmem:[#allocation2 + $0x10] sm:$0xf] %v59_v20  ;;  %62 = vst [vmem:[#allocation2 + $0xb0] sm:$0xf] %v61_v22  ;;  %v1027_v16 = vld [vmem:[%s1868_s8] sm:$0x3] }
  0xeb   :  { %65 = vst [vmem:[#allocation2 + $0x48] sm:$0xf] %v58_v21 }
  0xec   :  { %v101_v23 = vpop.permute.xlu0 %100  ;;  %v103_v24 = vpop.permute.xlu1 %102 }
  0xed   :  { %v111_v25 = vsel %vm108_vm8, %v101_v23, %v103_v24  ;;  %v428_v32 = vld [vmem:[#allocation2 + $0xd0] sm:$0xff] }
  0xee   :  { %114 = vst [vmem:[#allocation2 + $0x68] sm:$0xf] %v111_v25  ;;  %v500_v39 = vmul.f32 %v464_v33, %v428_v32 }
  0xf0   :  { %v105_v26 = vpop.permute.xlu0 %104  ;;  %v107_v27 = vpop.permute.xlu1 %106 }
  0xf1   :  { %v110_v28 = vsel %vm108_vm8, %v103_v24, %v105_v26  ;;  %v109_v30 = vsel %vm108_vm8, %v105_v26, %v107_v27  ;;  %v112_v31 = vsel %vm108_vm8, %v107_v27, %v101_v23  ;;  %v427_v41 = vld [vmem:[#allocation2 + $0xb0] sm:$0xff]  ;;  %v882_v27 = vld [vmem:[%s1869_s3 + $0x88] sm:$0xf] }
  0xf2   :  { %115 = vst [vmem:[#allocation2 + $0x30] sm:$0xf] %v110_v28  ;;  %113 = vst [vmem:[#allocation2 + $0x108] sm:$0xf] %v112_v31  ;;  %v430_v43 = vld [vmem:[#allocation2 + $0x48] sm:$0xff]  ;;  %v429_v45 = vld [vmem:[#allocation2 + $0x10] sm:$0xff]  ;;  %v499_v49 = vmul.f32 %v463_v35, %v427_v41 }
  0xf3   :  { %116 = vst [vmem:[#allocation2 + $0x18] sm:$0xf] %v109_v30  ;;  %v502_v51 = vmul.f32 %v466_v37, %v430_v43  ;;  %v501_v55 = vmul.f32 %v465_v38, %v429_v45  ;;  %v881_v28 = vld [vmem:[%s1869_s3 + $0x80] sm:$0xf] }
  0xf5   :  { %v432_v36 = vld [vmem:[#allocation2 + $0x68] sm:$0xff] }
  0xf6   :  { %v504_v40 = vmul.f32 %v468_v34, %v432_v36 }
  0xf8   :  { %v536_v47 = vpack.c.bf16 %v504_v40, %v500_v39  ;;  %v884_v40 = vld [vmem:[%s1869_s3 + $0x98] sm:$0xf] }
  0xf9   :  { %v431_v48 = vld [vmem:[#allocation2 + $0x108] sm:$0xff]  ;;  %v433_v52 = vld [vmem:[#allocation2 + $0x30] sm:$0xff] }
  0xfa   :  { %v434_v50 = vld [vmem:[#allocation2 + $0x18] sm:$0xff]  ;;  %593 = vmatprep.subr.bf16.mxu0 %v536_v47  ;;  %v503_v53 = vmul.f32 %v467_v42, %v431_v48  ;;  %v505_v56 = vmul.f32 %v469_v46, %v433_v52 }
  0xfb   :  { %v506_v54 = vmul.f32 %v470_v44, %v434_v50  ;;  %v883_v44 = vld [vmem:[%s1869_s3 + $0x90] sm:$0xf] }
  0xfc   :  { %v535_v57 = vpack.c.bf16 %v503_v53, %v499_v49  ;;  %v537_v59 = vpack.c.bf16 %v505_v56, %v501_v55 }
  0xfd   :  { %v538_v58 = vpack.c.bf16 %v506_v54, %v502_v51  ;;  %v560_v61 = vpop.permute.xlu0 %559 }
  0xfe   :  { %594 = vmatpush1.bf16.msra.mxu0 %v535_v57 }
  0xff   :  { %634 = vmatprep.subr.bf16.mxu1 %v538_v58 }
 0x100   :  { %635 = vmatpush1.bf16.msra.mxu1 %v537_v59 }
 0x101   :  { %1134 = vmatmul.mubr.msk.bf16.vlgmr.msra.gmra.mxu0 %vm562_vm9, %v555_v60 }
 0x102   :  { %973 = vmatprep.mubr.bf16.mxu0 %v1187_v29 }
 0x103   :  { %1136 = vmatmul.mubr.msk.bf16.vlgmr.msra.gmra.mxu1 %vm562_vm9, %v555_v60 }
 0x104   :  { %1014 = vmatprep.mubr.bf16.mxu1 %v1187_v29 }
 0x1c1   :  { %v613_v62 = vpop.f32.mrf.mxu0 }
 0x1c2   :  { %v614_v63 = vadd.f32 %v613_v62, %v560_v61 }
 0x1c3   :  { %v654_v0 = vpop.f32.mrf.mxu1  ;;  %v615_v2 = vpop.f32.mrf.mxu0 }
 0x1c4   :  { %v655_v1 = vadd.f32 %v654_v0, %v560_v61  ;;  %v661_v3 = vmax.f32 %v614_v63, 0.0  ;;  %v616_v4 = vadd.f32 %v615_v2, %v560_v61 }
 0x1c5   :  { %v656_v5 = vpop.f32.mrf.mxu1  ;;  %v617_v8 = vpop.f32.mrf.mxu0 }
 0x1c6   :  { %v663_v6 = vmax.f32 %v655_v1, 0.0  ;;  %v657_v7 = vadd.f32 %v656_v5, %v560_v61  ;;  %753 = vst [vmem:[#allocation3 + $0x30] sm:$0xf] %v661_v3  ;;  %v662_v9 = vmax.f32 %v616_v4, 0.0  ;;  %829 = vrot.lane.b32.xlu1 %v661_v3, %s1179_s19 }
 0x1c7   :  { %v658_v12 = vpop.f32.mrf.mxu1  ;;  %v618_v29 = vpop.f32.mrf.mxu0 }
 0x1c8   :  { %755 = vst [vmem:[#allocation3] sm:$0xf] %v663_v6  ;;  %v664_v13 = vmax.f32 %v657_v7, 0.0  ;;  %833 = vrot.lane.b32.xlu0 %v663_v6, %s1179_s19  ;;  %754 = vst [vmem:[#allocation3 + $0x60] sm:$0xf] %v662_v9 }
 0x1c9   :  { %v659_v14 = vpop.f32.mrf.mxu1 }
 0x1ca   :  { %756 = vst [vmem:[#allocation3 + $0x38] sm:$0xf] %v664_v13  ;;  %831 = vrot.lane.b32.xlu1 %v662_v9, %s1179_s19 }
 0x1cc   :  { %757 = vrot.lane.b32.xlu0 %v661_v3, %s1182_s22 }
 0x1ce   :  { %835 = vrot.lane.b32.xlu1 %v664_v13, %s1179_s19 }
 0x1d0   :  { %761 = vrot.lane.b32.xlu0 %v663_v6, %s1182_s22 }
 0x1d2   :  { %759 = vrot.lane.b32.xlu1 %v662_v9, %s1182_s22 }
 0x1d4   :  { %801 = vrot.lane.b32.xlu0 %v661_v3, %s1181_s21 }
 0x1d6   :  { %763 = vrot.lane.b32.xlu1 %v664_v13, %s1182_s22 }
 0x1d8   :  { %805 = vrot.lane.b32.xlu0 %v663_v6, %s1181_s21 }
 0x1da   :  { %803 = vrot.lane.b32.xlu1 %v662_v9, %s1181_s21 }
 0x1dc   :  { %785 = vrot.lane.b32.xlu0 %v661_v3, %s1180_s0 }
 0x1de   :  { %807 = vrot.lane.b32.xlu1 %v664_v13, %s1181_s21 }
 0x1e0   :  { %789 = vrot.lane.b32.xlu0 %v663_v6, %s1180_s0 }
 0x1e2   :  { %787 = vrot.lane.b32.xlu1 %v662_v9, %s1180_s0 }
 0x1e4   :  { %681 = vrot.lane.b32.xlu0 %v661_v3, %s1186_s26 }
 0x1e6   :  { %791 = vrot.lane.b32.xlu1 %v664_v13, %s1180_s0 }
 0x1e8   :  { %685 = vrot.lane.b32.xlu0 %v663_v6, %s1186_s26 }
 0x1ea   :  { %683 = vrot.lane.b32.xlu1 %v662_v9, %s1186_s26 }
 0x1ec   :  { %725 = vrot.lane.b32.xlu0 %v661_v3, %s1184_s24 }
 0x1ee   :  { %687 = vrot.lane.b32.xlu1 %v664_v13, %s1186_s26 }
 0x1f0   :  { %729 = vrot.lane.b32.xlu0 %v663_v6, %s1184_s24 }
 0x1f2   :  { %727 = vrot.lane.b32.xlu1 %v662_v9, %s1184_s24 }
 0x1f4   :  { %665 = vrot.lane.b32.xlu0 %v661_v3, %s1185_s25 }
 0x1f6   :  { %731 = vrot.lane.b32.xlu1 %v664_v13, %s1184_s24 }
 0x1f8   :  { %669 = vrot.lane.b32.xlu0 %v663_v6, %s1185_s25 }
 0x1fa   :  { %667 = vrot.lane.b32.xlu1 %v662_v9, %s1185_s25 }
 0x1fc   :  { %709 = vrot.lane.b32.xlu0 %v661_v3, %s1183_s23 }
 0x1fe   :  { %671 = vrot.lane.b32.xlu1 %v664_v13, %s1185_s25 }
 0x200   :  { %713 = vrot.lane.b32.xlu0 %v663_v6, %s1183_s23 }
 0x202   :  { %711 = vrot.lane.b32.xlu1 %v662_v9, %s1183_s23 }
 0x204   :  { %921 = vperm.xlu0 %1155, %v918_v15   ;;  %v874_v15 = vld [vmem:[%s1869_s3 + $0x48] sm:$0xff] }
 0x206   :  { %715 = vrot.lane.b32.xlu1 %v664_v13, %s1183_s23 }
 0x20a   :  { %1030 = vperm.xlu1 %1156, %v1027_v16  }
 0x238   :  { %v830_v17 = vpop.permute.xlu1 %829 }
 0x23a   :  { %v834_v18 = vpop.permute.xlu0 %833 }
 0x23c   :  { %v832_v19 = vpop.permute.xlu1 %831 }
 0x23d   :  { %v838_v20 = vsel %vm390_vm0, %v832_v19, %v834_v18  ;;  %v839_v21 = vsel %vm390_vm0, %v830_v17, %v832_v19  ;;  %v878_v19 = vld [vmem:[%s1869_s3 + $0x68] sm:$0xff] }
 0x23e   :  { %v758_v22 = vpop.permute.xlu0 %757  ;;  %841 = vst [vmem:[#allocation3 + $0x48] sm:$0xf] %v839_v21  ;;  %842 = vst [vmem:[#allocation3 + $0x58] sm:$0xf] %v838_v20  ;;  %v877_v20 = vld [vmem:[%s1869_s3 + $0x60] sm:$0xff] }
 0x240   :  { %v836_v23 = vpop.permute.xlu1 %835 }
 0x241   :  { %v837_v24 = vsel %vm390_vm0, %v834_v18, %v836_v23  ;;  %v840_v25 = vsel %vm390_vm0, %v836_v23, %v830_v17  ;;  %v873_v18 = vld [vmem:[%s1869_s3 + $0x40] sm:$0xff] }
 0x242   :  { %v762_v26 = vpop.permute.xlu0 %761  ;;  %843 = vst [vmem:[#allocation3 + $0x70] sm:$0xf] %v837_v24  ;;  %844 = vst [vmem:[#allocation3 + $0x10] sm:$0xf] %v840_v25 }
 0x244   :  { %v760_v30 = vpop.permute.xlu1 %759 }
 0x245   :  { %v766_v31 = vsel %vm255_vm4, %v760_v30, %v762_v26  ;;  %v767_v32 = vsel %vm255_vm4, %v758_v22, %v760_v30  ;;  %v862_v34 = vld [vmem:[#allocation3 + $0x58] sm:$0xf]  ;;  %v861_v35 = vld [vmem:[#allocation3 + $0x48] sm:$0xf] }
 0x246   :  { %v802_v33 = vpop.permute.xlu0 %801  ;;  %v773_v36 = vrot.slane %v767_v32, 4  ;;  %v774_v37 = vrot.slane %v766_v31, 4  ;;  %v902_v38 = vmul.f32 %v882_v27, %v862_v34  ;;  %v901_v39 = vmul.f32 %v881_v28, %v861_v35  ;;  %v876_v30 = vld [vmem:[%s1869_s3 + $0x58] sm:$0xff] }
 0x248   :  { %781 = vst [vmem:[#allocation3 + $0x30] sm:$0xf0] %v773_v36  ;;  %782 = vst [vmem:[#allocation3 + $0x60] sm:$0xf0] %v774_v37  ;;  %v764_v41 = vpop.permute.xlu1 %763  ;;  %v914_v42 = vpack.c.bf16 %v902_v38, %v902_v38  ;;  %v913_v43 = vpack.c.bf16 %v901_v39, %v901_v39  ;;  %v875_v37 = vld [vmem:[%s1869_s3 + $0x50] sm:$0xff]  ;;  %v880_v38 = vld [vmem:[%s1869_s3 + $0x78] sm:$0xff] }
 0x249   :  { %v765_v45 = vsel %vm255_vm4, %v762_v26, %v764_v41  ;;  %v768_v46 = vsel %vm255_vm4, %v764_v41, %v758_v22  ;;  %v864_v48 = vld [vmem:[#allocation3 + $0x10] sm:$0xf] }
 0x24a   :  { %v806_v47 = vpop.permute.xlu0 %805  ;;  %v863_v49 = vld [vmem:[#allocation3 + $0x70] sm:$0xf]  ;;  %v775_v50 = vrot.slane %v765_v45, 4  ;;  %v776_v51 = vrot.slane %v768_v46, 4  ;;  %1137 = vmatprep.subr.msk.bf16.mxu0 %vm928_vm10, %v914_v42  ;;  %v930_v52 = vsel %vm928_vm10, %v913_v43, 0  ;;  %v904_v53 = vmul.f32 %v884_v40, %v864_v48 }
 0x24b   :  { %952 = vmatpush1.bf16.msra.mxu0 %v930_v52  ;;  %v903_v54 = vmul.f32 %v883_v44, %v863_v49  ;;  %v879_v39 = vld [vmem:[%s1869_s3 + $0x70] sm:$0xff] }
 0x24c   :  { %783 = vst [vmem:[#allocation3] sm:$0xf0] %v775_v50  ;;  %784 = vst [vmem:[#allocation3 + $0x38] sm:$0xf0] %v776_v51  ;;  %v804_v55 = vpop.permute.xlu1 %803  ;;  %v916_v56 = vpack.c.bf16 %v904_v53, %v904_v53 }
 0x24d   :  { %v810_v57 = vsel %vm345_vm2, %v804_v55, %v806_v47  ;;  %v811_v58 = vsel %vm345_vm2, %v802_v33, %v804_v55  ;;  %v915_v60 = vpack.c.bf16 %v903_v54, %v903_v54 }
 0x24e   :  { %v786_v59 = vpop.permute.xlu0 %785  ;;  %v817_v61 = vrot.slane %v811_v58, 4  ;;  %v818_v62 = vrot.slane %v810_v57, 4  ;;  %1139 = vmatprep.subr.msk.bf16.mxu1 %vm928_vm10, %v916_v56 }
 0x24f   :  { %v936_v63 = vsel %vm928_vm10, %v915_v60, 0  ;;  %v854_v16 = vld [vmem:[#allocation3 + $0x60] sm:$0xff]  ;;  %v853_v17 = vld [vmem:[#allocation3 + $0x30] sm:$0xff] }
 0x250   :  { %825 = vst [vmem:[#allocation3 + $0x88] sm:$0xf0] %v817_v61  ;;  %826 = vst [vmem:[#allocation3 + $0x28] sm:$0xf0] %v818_v62  ;;  %993 = vmatpush1.bf16.msra.mxu1 %v936_v63  ;;  %v808_v0 = vpop.permute.xlu1 %807  ;;  %v894_v26 = vmul.f32 %v874_v15, %v854_v16  ;;  %v893_v28 = vmul.f32 %v873_v18, %v853_v17 }
 0x251   :  { %v809_v1 = vsel %vm345_vm2, %v806_v47, %v808_v0  ;;  %v812_v2 = vsel %vm345_vm2, %v808_v0, %v802_v33 }
 0x252   :  { %v790_v3 = vpop.permute.xlu0 %789  ;;  %v819_v4 = vrot.slane %v809_v1, 4  ;;  %v820_v5 = vrot.slane %v812_v2, 4 }
 0x253   :  { %v856_v35 = vld [vmem:[#allocation3 + $0x38] sm:$0xff]  ;;  %v855_v36 = vld [vmem:[#allocation3] sm:$0xff] }
 0x254   :  { %827 = vst [vmem:[#allocation3 + $0x8] sm:$0xf0] %v819_v4  ;;  %828 = vst [vmem:[#allocation3 + $0x50] sm:$0xf0] %v820_v5  ;;  %v788_v6 = vpop.permute.xlu1 %787  ;;  %v896_v47 = vmul.f32 %v876_v30, %v856_v35  ;;  %v895_v49 = vmul.f32 %v875_v37, %v855_v36  ;;  %v867_v35 = vld [vmem:[%s1869_s3 + $0x10] sm:$0xff] }
 0x255   :  { %v794_v7 = vsel %vm300_vm1, %v788_v6, %v790_v3  ;;  %v795_v8 = vsel %vm300_vm1, %v786_v59, %v788_v6 }
 0x256   :  { %v682_v9 = vpop.permute.xlu0 %681  ;;  %797 = vst [vmem:[#allocation3 + $0x88] sm:$0xf] %v795_v8  ;;  %798 = vst [vmem:[#allocation3 + $0x28] sm:$0xf] %v794_v7 }
 0x258   :  { %v792_v12 = vpop.permute.xlu1 %791 }
 0x259   :  { %v793_v13 = vsel %vm300_vm1, %v790_v3, %v792_v12  ;;  %v796_v29 = vsel %vm300_vm1, %v792_v12, %v786_v59 }
 0x25a   :  { %v686_v14 = vpop.permute.xlu0 %685  ;;  %799 = vst [vmem:[#allocation3 + $0x8] sm:$0xf] %v793_v13  ;;  %800 = vst [vmem:[#allocation3 + $0x50] sm:$0xf] %v796_v29 }
 0x25c   :  { %v684_v21 = vpop.permute.xlu1 %683 }
 0x25d   :  { %v690_v22 = vsel %vm108_vm8, %v684_v21, %v686_v14  ;;  %v691_v23 = vsel %vm108_vm8, %v682_v9, %v684_v21  ;;  %v858_v25 = vld [vmem:[#allocation3 + $0x28] sm:$0xff] }
 0x25e   :  { %v726_v24 = vpop.permute.xlu0 %725  ;;  %v857_v27 = vld [vmem:[#allocation3 + $0x88] sm:$0xff]  ;;  %v698_v31 = vrot.slane %v691_v23, 4  ;;  %v699_v32 = vrot.slane %v690_v22, 4  ;;  %v898_v33 = vmul.f32 %v878_v19, %v858_v25  ;;  %v865_v23 = vld [vmem:[%s1869_s3] sm:$0xff] }
 0x25f   :  { %v897_v34 = vmul.f32 %v877_v20, %v857_v27  ;;  %v866_v20 = vld [vmem:[%s1869_s3 + $0x8] sm:$0xff] }
 0x260   :  { %706 = vst [vmem:[#allocation3 + $0x68] sm:$0xf0] %v698_v31  ;;  %707 = vst [vmem:[#allocation3 + $0x78] sm:$0xf0] %v699_v32  ;;  %v688_v40 = vpop.permute.xlu1 %687  ;;  %v910_v41 = vpack.c.bf16 %v898_v33, %v894_v26  ;;  %v870_v21 = vld [vmem:[%s1869_s3 + $0x28] sm:$0xff]  ;;  %v869_v26 = vld [vmem:[%s1869_s3 + $0x20] sm:$0xff] }
 0x261   :  { %v909_v42 = vpack.c.bf16 %v897_v34, %v893_v28  ;;  %v689_v43 = vsel %vm108_vm8, %v686_v14, %v688_v40  ;;  %v692_v44 = vsel %vm108_vm8, %v688_v40, %v682_v9  ;;  %v860_v46 = vld [vmem:[#allocation3 + $0x50] sm:$0xff]  ;;  %v859_v48 = vld [vmem:[#allocation3 + $0x8] sm:$0xff]  ;;  %v872_v32 = vld [vmem:[%s1869_s3 + $0x38] sm:$0xff] }
 0x262   :  { %v730_v45 = vpop.permute.xlu0 %729  ;;  %v697_v50 = vrot.slane %v692_v44, 4  ;;  %v700_v51 = vrot.slane %v689_v43, 4  ;;  %953 = vmatprep.subr.bf16.mxu0 %v910_v41  ;;  %v900_v52 = vmul.f32 %v880_v38, %v860_v46  ;;  %v899_v53 = vmul.f32 %v879_v39, %v859_v48  ;;  %v871_v28 = vld [vmem:[%s1869_s3 + $0x30] sm:$0xff] }
 0x263   :  { %954 = vmatpush1.bf16.msra.mxu0 %v909_v42 }
 0x264   :  { %705 = vst [vmem:[#allocation3 + $0x80] sm:$0xf0] %v697_v50  ;;  %708 = vst [vmem:[#allocation3 + $0x40] sm:$0xf0] %v700_v51  ;;  %v728_v54 = vpop.permute.xlu1 %727  ;;  %v912_v55 = vpack.c.bf16 %v900_v52, %v896_v47  ;;  %v911_v56 = vpack.c.bf16 %v899_v53, %v895_v49  ;;  %v917_v47 = vld [vmem:[%s1870_s6] sm:$0x1] }
 0x265   :  { %v734_v57 = vsel %vm198_vm6, %v728_v54, %v730_v45  ;;  %v735_v58 = vsel %vm198_vm6, %v726_v24, %v728_v54 }
 0x266   :  { %v666_v59 = vpop.permute.xlu0 %665  ;;  %v742_v60 = vrot.slane %v735_v58, 4  ;;  %v743_v61 = vrot.slane %v734_v57, 4  ;;  %994 = vmatprep.subr.bf16.mxu1 %v912_v55 }
 0x267   :  { %995 = vmatpush1.bf16.msra.mxu1 %v911_v56 }
 0x268   :  { %750 = vst [vmem:[#allocation3 + $0x98] sm:$0xf0] %v742_v60  ;;  %751 = vst [vmem:[#allocation3 + $0x18] sm:$0xf0] %v743_v61  ;;  %v732_v62 = vpop.permute.xlu1 %731 }
 0x269   :  { %v733_v63 = vsel %vm198_vm6, %v730_v45, %v732_v62  ;;  %v736_v0 = vsel %vm198_vm6, %v732_v62, %v726_v24 }
 0x26a   :  { %v670_v1 = vpop.permute.xlu0 %669  ;;  %v741_v2 = vrot.slane %v736_v0, 4  ;;  %v744_v3 = vrot.slane %v733_v63, 4 }
 0x26c   :  { %749 = vst [vmem:[#allocation3 + $0x90] sm:$0xf0] %v741_v2  ;;  %752 = vst [vmem:[#allocation3 + $0x20] sm:$0xf0] %v744_v3  ;;  %v668_v4 = vpop.permute.xlu1 %667 }
 0x26d   :  { %v674_v5 = vsel %vm57_vm7, %v668_v4, %v670_v1  ;;  %v675_v6 = vsel %vm57_vm7, %v666_v59, %v668_v4 }
 0x26e   :  { %678 = vst [vmem:[#allocation3 + $0x68] sm:$0xf] %v675_v6  ;;  %679 = vst [vmem:[#allocation3 + $0x78] sm:$0xf] %v674_v5  ;;  %v710_v7 = vpop.permute.xlu0 %709 }
 0x270   :  { %v672_v8 = vpop.permute.xlu1 %671 }
 0x271   :  { %v673_v9 = vsel %vm57_vm7, %v670_v1, %v672_v8  ;;  %v676_v12 = vsel %vm57_vm7, %v672_v8, %v666_v59 }
 0x272   :  { %677 = vst [vmem:[#allocation3 + $0x80] sm:$0xf] %v676_v12  ;;  %680 = vst [vmem:[#allocation3 + $0x40] sm:$0xf] %v673_v9  ;;  %v714_v13 = vpop.permute.xlu0 %713 }
 0x274   :  { %v712_v29 = vpop.permute.xlu1 %711 }
 0x275   :  { %v718_v14 = vsel %vm153_vm5, %v712_v29, %v714_v13  ;;  %v719_v15 = vsel %vm153_vm5, %v710_v7, %v712_v29  ;;  %v846_v19 = vld [vmem:[#allocation3 + $0x68] sm:$0xff]  ;;  %v847_v34 = vld [vmem:[#allocation3 + $0x78] sm:$0xff] }
 0x276   :  { %722 = vst [vmem:[#allocation3 + $0x98] sm:$0xf] %v719_v15  ;;  %723 = vst [vmem:[#allocation3 + $0x18] sm:$0xf] %v718_v14  ;;  %v886_v24 = vmul.f32 %v866_v20, %v846_v19  ;;  %v887_v43 = vmul.f32 %v867_v35, %v847_v34 }
 0x278   :  { %v716_v16 = vpop.permute.xlu1 %715 }
 0x279   :  { %v717_v17 = vsel %vm153_vm5, %v714_v13, %v716_v16  ;;  %v720_v18 = vsel %vm153_vm5, %v716_v16, %v710_v7  ;;  %v845_v30 = vld [vmem:[#allocation3 + $0x80] sm:$0xff] }
 0x27a   :  { %721 = vst [vmem:[#allocation3 + $0x90] sm:$0xf] %v720_v18  ;;  %724 = vst [vmem:[#allocation3 + $0x20] sm:$0xf] %v717_v17  ;;  %v848_v31 = vld [vmem:[#allocation3 + $0x40] sm:$0xff]  ;;  %v885_v39 = vmul.f32 %v865_v23, %v845_v30 }
 0x27b   :  { %v888_v41 = vmul.f32 %v868_v11, %v848_v31 }
 0x27d   :  { %v850_v22 = vld [vmem:[#allocation3 + $0x98] sm:$0xff] }
 0x27e   :  { %v890_v25 = vmul.f32 %v870_v21, %v850_v22  ;;  %v851_v27 = vld [vmem:[#allocation3 + $0x18] sm:$0xff] }
 0x27f   :  { %v891_v38 = vmul.f32 %v871_v28, %v851_v27  ;;  %v922_v48 = vpop.permute.xlu0 %921 }
 0x280   :  { %v906_v33 = vpack.c.bf16 %v890_v25, %v886_v24 }
 0x281   :  { %v849_v36 = vld [vmem:[#allocation3 + $0x90] sm:$0xff]  ;;  %v852_v37 = vld [vmem:[#allocation3 + $0x20] sm:$0xff]  ;;  %v907_v46 = vpack.c.bf16 %v891_v38, %v887_v43 }
 0x282   :  { %955 = vmatprep.subr.bf16.mxu0 %v906_v33  ;;  %v889_v40 = vmul.f32 %v869_v26, %v849_v36  ;;  %v892_v42 = vmul.f32 %v872_v32, %v852_v37  ;;  %v1066_v26 = vstv %s1871_s9 }
 0x284   :  { %v905_v44 = vpack.c.bf16 %v889_v40, %v885_v39  ;;  %v908_v45 = vpack.c.bf16 %v892_v42, %v888_v41 }
 0x285   :  { %v1031_v54 = vpop.permute.xlu1 %1030 }
 0x286   :  { %956 = vmatpush1.bf16.msra.mxu0 %v905_v44  ;;  %996 = vmatprep.subr.bf16.mxu1 %v908_v45 }
 0x287   :  { %997 = vmatpush1.bf16.msra.mxu1 %v907_v46 }
 0x289   :  { %1138 = vmatmul.mubr.msk.bf16.vlgmr.msra.gmra.mxu0 %vm924_vm11, %v917_v47 }
 0x28a   :  { %1140 = vmatmul.mubr.msk.bf16.vlgmr.msra.gmra.mxu1 %vm924_vm11, %v917_v47 }
 0x349   :  { %v975_v49 = vpop.f32.mrf.mxu0 }
 0x34a   :  { %v976_v50 = vadd.f32 %v975_v49, %v922_v48  ;;  %v1016_v51 = vpop.f32.mrf.mxu1 }
 0x34b   :  { %v1017_v52 = vadd.f32 %v1016_v51, %v922_v48  ;;  %v977_v53 = vpop.f32.mrf.mxu0 }
 0x34c   :  { %v1023_v55 = vmax.f32 %v976_v50, 0.0  ;;  %v978_v56 = vadd.f32 %v977_v53, %v922_v48  ;;  %v1018_v57 = vpop.f32.mrf.mxu1 }
 0x34d   :  { %v1025_v58 = vmax.f32 %v1017_v52, 0.0  ;;  %v1019_v59 = vadd.f32 %v1018_v57, %v922_v48  ;;  %v979_v60 = vpop.f32.mrf.mxu0  ;;  %v1188_v52 = vmov 1966171168  }
 0x34e   :  { %v1024_v61 = vmax.f32 %v978_v56, 0.0  ;;  %v1033_v62 = vmul.f32 %v1031_v54, %v1023_v55  ;;  %v1020_v63 = vpop.f32.mrf.mxu1  ;;  %v1102_v53 = vunpack.c.l.s4 %v1188_v52  ;;  %v1105_v55 = vshrl.u32 %v55_v10, 7 }
 0x34f   :  { %v1026_v0 = vmax.f32 %v1019_v59, 0.0  ;;  %v1035_v1 = vmul.f32 %v1031_v54, %v1025_v58  ;;  %v980_v2 = vpop.f32.mrf.mxu0 }
 0x350   :  { %v1034_v3 = vmul.f32 %v1031_v54, %v1024_v61  ;;  %v1037_v4 = vsel %vm928_vm10, %v1033_v62, 0.0  ;;  %v1021_v5 = vpop.f32.mrf.mxu1 }
 0x351   :  { %v1036_v6 = vmul.f32 %v1031_v54, %v1026_v0  ;;  %v1038_v7 = vrot.slane %v1037_v4, 4  ;;  %v1051_v8 = vsel %vm928_vm10, %v1035_v1, 0.0  ;;  %v1103_v54 = vunpack.c.0.s8 %v1102_v53 }
 0x352   :  { %v1044_v9 = vsel %vm928_vm10, %v1034_v3, 0.0  ;;  %v1052_v12 = vrot.slane %v1051_v8, 4 }
 0x353   :  { %v1039_v13 = vadd.f32 %v1038_v7, %v1037_v4  ;;  %v1045_v29 = vrot.slane %v1044_v9, 4  ;;  %v1058_v14 = vsel %vm928_vm10, %v1036_v6, 0.0  ;;  %v1106_v58 = vsub.s32 %v1103_v54, %v1105_v55 }
 0x354   :  { %v1053_v15 = vadd.f32 %v1052_v12, %v1051_v8  ;;  %v1059_v16 = vrot.slane %v1058_v14, 4 }
 0x355   :  { %v1040_v17 = vrot.slane %v1039_v13, 2  ;;  %v1046_v18 = vadd.f32 %v1045_v29, %v1044_v9 }
 0x356   :  { %v1054_v19 = vrot.slane %v1053_v15, 2  ;;  %v1060_v20 = vadd.f32 %v1059_v16, %v1058_v14 }
 0x357   :  { %v1041_v21 = vadd.f32 %v1040_v17, %v1039_v13  ;;  %v1047_v22 = vrot.slane %v1046_v18, 2 }
 0x358   :  { %v1055_v23 = vadd.f32 %v1054_v19, %v1053_v15  ;;  %v1061_v11 = vrot.slane %v1060_v20, 2 }
 0x359   :  { %v1042_v24 = vrot.slane %v1041_v21, 1  ;;  %v1048_v25 = vadd.f32 %v1047_v22, %v1046_v18 }
 0x35a   :  { %v1056_v27 = vrot.slane %v1055_v23, 1  ;;  %v1062_v28 = vadd.f32 %v1061_v11, %v1060_v20 }
 0x35b   :  { %v1043_v30 = vadd.f32 %v1042_v24, %v1041_v21  ;;  %v1049_v31 = vrot.slane %v1048_v25, 1 }
 0x35c   :  { %v1057_v32 = vadd.f32 %v1056_v27, %v1055_v23  ;;  %v1063_v33 = vrot.slane %v1062_v28, 1 }
 0x35d   :  { %v1050_v34 = vadd.f32 %v1049_v31, %v1048_v25  ;;  %v1067_v35 = vadd.f32 %v1066_v26, %v1043_v30 }
 0x35e   :  { %v1064_v36 = vadd.f32 %v1063_v33, %v1062_v28  ;;  %v1069_v37 = vadd.f32 %v1066_v26, %v1057_v32 }
 0x35f   :  { %v1068_v38 = vadd.f32 %v1066_v26, %v1050_v34  ;;  %v1141_v39 = vmul.f32 -1.442695, %v1067_v35 }
 0x360   :  { %v1070_v40 = vadd.f32 %v1066_v26, %v1064_v36  ;;  %v1143_v41 = vmul.f32 -1.442695, %v1069_v37 }
 0x361   :  { %1163 = vpow2.f32 %v1141_v39  ;;  %v1142_v42 = vmul.f32 -1.442695, %v1068_v38 }
 0x362   :  { %1165 = vpow2.f32 %v1143_v41  ;;  %v1144_v43 = vmul.f32 -1.442695, %v1070_v40 }
 0x363   :  { %1167 = vpow2.f32 %v1142_v42 }
 0x364   :  { %1169 = vpow2.f32 %v1144_v43 }
 0x36e   :  { %v1164_v44 = vpop.eup %1163 }
 0x36f   :  { %v1166_v45 = vpop.eup %1165  ;;  %v1083_v46 = vadd.f32 1.0, %v1164_v44 }
 0x370   :  { %v1168_v47 = vpop.eup %1167  ;;  %v1085_v48 = vadd.f32 1.0, %v1166_v45 }
 0x371   :  { %v1170_v49 = vpop.eup %1169  ;;  %v1084_v50 = vadd.f32 1.0, %v1168_v47  ;;  %1171 = vrcp.f32 %v1083_v46 }
 0x372   :  { %v1086_v51 = vadd.f32 1.0, %v1170_v49  ;;  %1173 = vrcp.f32 %v1085_v48 }
 0x373   :  { %1175 = vrcp.f32 %v1084_v50 }
 0x374   :  { %1177 = vrcp.f32 %v1086_v51 }
 0x37e   :  { %v1172_v56 = vpop.eup %1171 }
 0x37f   :  { %v1174_v57 = vpop.eup %1173 }
 0x380   :  { %v1176_v59 = vpop.eup %1175 }
 0x381   :  { %v1178_v60 = vpop.eup %1177  ;;  %v1099_v61 = vcombine.low %v1172_v56, %v1176_v59 }
 0x382   :  { %v1100_v62 = vcombine.low %v1174_v57, %v1178_v60 }
 0x383   :  { %v1107_v63 = vrot.slane %v1099_v61, %v1106_v58 }
 0x384   :  { %v1114_v0 = vrot.slane %v1100_v62, %v1106_v58 }
 0x386   :  { %v1115_v1 = vcombine.low %v1107_v63, %v1114_v0 }
 0x388   :  { %v1122_v2 = vrot.slane %v1115_v1, %v1106_v58 }
 0x38a   :  { %1128 = vst.msk [vmem:[%s1872_s10] sm:$0xf] %vm1126_vm12, %v1122_v2 }

</bundles_post_ra>
